<compile_context>
chip_gen: v7x
topology: tpu7x:2x2x1
jax: 0.10.0
libtpu: 0.0.40
codegen_flags: <defaults>
</compile_context>

<pallas_src>
import functools

import jax
import jax.numpy as jnp
from jax.experimental import pallas as pl
from jax.experimental.pallas import tpu as pltpu


# ----------------------------------------------------------------------------
# Weight construction (exact reproduction of the torch module's kernel).
# ----------------------------------------------------------------------------
def _create_gaussian_kernel_3d(kernel_size: int, sigma: float) -> jnp.ndarray:
    """Full 3-D kernel exactly as the PyTorch module builds it (for reference)."""
    c = jnp.arange(kernel_size, dtype=jnp.float32) - (kernel_size // 2)
    coords = jnp.broadcast_to(c, (kernel_size,) * 3)        # coords[i,j,k] = c[k]
    g = jnp.exp(
        -(
            coords ** 2
            + jnp.transpose(coords, (1, 0, 2)) ** 2          # torch .transpose(0, 1)
            + jnp.transpose(coords, (2, 1, 0)) ** 2          # torch .transpose(0, 2)
        )
        / (2.0 * sigma ** 2)
    )
    return g / jnp.sum(g)


def _separable_gaussian_taps(kernel_size: int, sigma: float):
    """Exact separable factorization of the torch kernel: g = wD[i]*wH[j]*wW[k]."""
    c = jnp.arange(kernel_size, dtype=jnp.float32) - (kernel_size // 2)
    wd = jnp.exp(-(c ** 2) / (2.0 * sigma ** 2))             # D axis (kernel dim i)
    wd = wd / jnp.sum(wd)
    wh = jnp.full((kernel_size,), 1.0 / kernel_size, jnp.float32)   # H axis (dim j): constant
    ww = jnp.exp(-(c ** 2) / (sigma ** 2))                   # W axis (dim k): 2*c^2/(2 s^2)
    ww = ww / jnp.sum(ww)
    return wd, wh, ww


def _banded_from_taps(taps: jnp.ndarray, n: int) -> jnp.ndarray:
    """B[i, j] = taps[i - j + p] if |i - j| <= p else 0 (zero padding implicit)."""
    k = taps.shape[0]
    p = k // 2
    i = jnp.arange(n)[:, None]
    j = jnp.arange(n)[None, :]
    d = i - j + p
    ok = jnp.logical_and(d >= 0, d < k)
    return jnp.where(ok, taps[jnp.clip(d, 0, k - 1)], 0.0).astype(jnp.float32)


# ----------------------------------------------------------------------------
# Pallas kernel
# ----------------------------------------------------------------------------
def _blur_kernel(wd_ref, x_ref, bh_ref, bw_ref, o_ref, *, K, D, TD):
    # wd_ref : (K,)  f32 D-axis taps in SMEM
    # x_ref  : (D, H, W) full volume for one batch (VMEM, resident across D tiles)
    # bh_ref : (H, H) f32 banded matrix, left-multiply  (H-axis 1-D conv)
    # bw_ref : (W, W) f32 banded matrix, right-multiply (W-axis 1-D conv)
    # o_ref  : (TD, H, W) output depth-slab
    p = K // 2
    d0 = pl.program_id(1) * TD                      # first output depth of this tile

    bh = bh_ref[...]
    bw = bw_ref[...]

    for s in range(TD):                             # static unroll over slab rows
        # --- D-axis 1-D conv: K leading-dim row loads, zero-pad via weight mask.
        acc = None
        for dz in range(K):
            gd = d0 + s + dz - p                    # global input depth index
            valid = jnp.logical_and(gd >= 0, gd < D)
            row = x_ref[jnp.clip(gd, 0, D - 1)]     # (H, W), leading-dim dynamic load
            w = jnp.where(valid, wd_ref[dz], jnp.float32(0.0))
            term = w * row.astype(jnp.float32)
            acc = term if acc is None else acc + term

        # --- H pass then W pass as banded matmuls on the MXU (no lane/sublane
        #     shifted slices, zero padding baked into Bh/Bw).
        y = jnp.dot(bh, acc, preferred_element_type=jnp.float32)
        y = jnp.dot(y, bw, preferred_element_type=jnp.float32)
        o_ref[s] = y.astype(o_ref.dtype)


# ----------------------------------------------------------------------------
# Wrapper
# ----------------------------------------------------------------------------
def gaussian_blur_3d(x, kernel_size: int = 5, sigma: float = 1.0, tile_d: int | None = None):
    """x: (N, 1, D, H, W) -> (N, 1, D, H, W); same semantics as the torch module."""
    if kernel_size % 2 == 0:
        raise ValueError("Kernel size should be odd.")
    N, C, D, H, W = x.shape
    if C != 1:
        raise ValueError("conv weight has in/out channels = 1, so C must be 1")
    K = kernel_size

    wd, wh, ww = _separable_gaussian_taps(K, sigma)
    bh = _banded_from_taps(wh, H).T          # Bh[h_out, h_in] = wH[h_in - h_out + p]
    bw = _banded_from_taps(ww, W)            # Bw[w_in, w_out] = wW[w_in - w_out + p]

    # Depth tile size (must divide D so every output block is full).
    if tile_d is None:
        tile_d = min(D, 8)
    tile_d = max(1, min(int(tile_d), D))
    while D % tile_d != 0:
        tile_d -= 1
    n_d_tiles = D // tile_d

    x3 = x.reshape(N, D, H, W)               # drop size-1 channel dim (free reshape)

    itemsize = jnp.dtype(x.dtype).itemsize
    vmem_need = (
        2 * (D * H * W + tile_d * H * W) * itemsize     # double-buffered in/out blocks
        + (H * H + W * W) * 4                           # banded matrices
    )
    vmem_limit = int(min(max(2 * vmem_need, 32 << 20), 64 << 20))

    kern = functools.partial(_blur_kernel, K=K, D=D, TD=tile_d)
    out = pl.pallas_call(
        kern,
        out_shape=jax.ShapeDtypeStruct((N, D, H, W), x.dtype),
        grid=(N, n_d_tiles),
        in_specs=[
            pl.BlockSpec(memory_space=pltpu.MemorySpace.SMEM),              # wd (K,)
            pl.BlockSpec((None, D, H, W), lambda n, t: (n, 0, 0, 0)),       # volume, resident per n
            pl.BlockSpec((H, H), lambda n, t: (0, 0)),                      # Bh
            pl.BlockSpec((W, W), lambda n, t: (0, 0)),                      # Bw
        ],
        out_specs=pl.BlockSpec((None, tile_d, H, W), lambda n, t: (n, t, 0, 0)),
        compiler_params=pltpu.CompilerParams(
            dimension_semantics=("parallel", "parallel"),
            vmem_limit_bytes=vmem_limit,
        ),
        cost_estimate=pl.CostEstimate(
            flops=2 * N * D * H * W * (K + H + W),
            transcendentals=0,
            bytes_accessed=2 * N * D * H * W * itemsize,
        ),
    )(wd, x3, bh, bw)
    return out.reshape(N, 1, D, H, W)


# ----------------------------------------------------------------------------
# Pure-JAX reference (direct 125-tap conv, exact torch semantics) + test
# ----------------------------------------------------------------------------
def _reference_blur(x, kernel_size=5, sigma=1.0):
    N, C, D, H, W = x.shape
    K = kernel_size
    p = K // 2
    g = _create_gaussian_kernel_3d(K, sigma)
    xp = jnp.pad(x[:, 0], ((0, 0), (p, p), (p, p), (p, p)))
    acc = jnp.zeros((N, D, H, W), jnp.float32)
    for i in range(K):
        for j in range(K):
            for k in range(K):
                acc = acc + g[i, j, k] * xp[:, i:i + D, j:j + H, k:k + W]
    return acc[:, None].astype(x.dtype)


if __name__ == "__main__":
    key = jax.random.PRNGKey(0)
    # Small shapes consistent with the module (C must be 1 for the 1x1xKxKxK weight).
    x = jax.random.normal(key, (2, 1, 8, 16, 16), dtype=jnp.float32)

    ref = _reference_blur(x, kernel_size=5, sigma=1.0)

    # Run with D tiling (2 depth tiles -> exercises the halo/boundary logic) ...
    out_tiled = jax.block_until_ready(gaussian_blur_3d(x, kernel_size=5, sigma=1.0, tile_d=4))
    # ... and with a single depth tile.
    out_full = jax.block_until_ready(gaussian_blur_3d(x, kernel_size=5, sigma=1.0))

    assert out_tiled.shape == x.shape, (out_tiled.shape, x.shape)
    err_t = float(jnp.max(jnp.abs(out_tiled - ref)))
    err_f = float(jnp.max(jnp.abs(out_full - ref)))
    assert err_t < 2e-5, f"tiled mismatch vs reference: max abs err {err_t}"
    assert err_f < 2e-5, f"full-tile mismatch vs reference: max abs err {err_f}"

    print("KERNEL_OK")
</pallas_src>

<mosaic_0001>
module attributes {stable_mosaic.version = 11 : i64} {
  func.func @_blur_kernel(%arg0: i32, %arg1: i32, %arg2: memref<5xf32, #tpu.memory_space<smem>>, %arg3: memref<1x8x16x16xf32, #tpu.memory_space<vmem>>, %arg4: memref<16x16xf32, #tpu.memory_space<vmem>>, %arg5: memref<16x16xf32, #tpu.memory_space<vmem>>, %arg6: memref<1x4x16x16xf32, #tpu.memory_space<vmem>>) attributes {dimension_semantics = [#tpu.dimension_semantics<parallel>, #tpu.dimension_semantics<parallel>], iteration_bounds = array<i64: 2, 2>, scalar_prefetch = 0 : i64, scratch_operands = 0 : i64, tpu.core_type = #tpu.core_type<tc>, window_params = [{transform_indices = @transform_0, window_bounds = array<i64: 5>}, {transform_indices = @transform_1, window_bounds = array<i64: 1, 8, 16, 16>}, {pipeline_mode = #tpu.pipeline_mode<synchronous>, transform_indices = @transform_2, window_bounds = array<i64: 16, 16>}, {pipeline_mode = #tpu.pipeline_mode<synchronous>, transform_indices = @transform_3, window_bounds = array<i64: 16, 16>}, {transform_indices = @transform_4, window_bounds = array<i64: 1, 4, 16, 16>}]} {
    %c4_i32 = arith.constant 4 : i32
    %0 = arith.muli %arg1, %c4_i32 : i32
    %c0 = arith.constant 0 : index
    %c0_0 = arith.constant 0 : index
    %1 = vector.load %arg4[%c0, %c0_0] : memref<16x16xf32, #tpu.memory_space<vmem>>, vector<16x16xf32>
    %c0_1 = arith.constant 0 : index
    %c0_2 = arith.constant 0 : index
    %2 = vector.load %arg5[%c0_1, %c0_2] : memref<16x16xf32, #tpu.memory_space<vmem>>, vector<16x16xf32>
    %c0_i32 = arith.constant 0 : i32
    %3 = arith.addi %0, %c0_i32 : i32
    %c0_i32_3 = arith.constant 0 : i32
    %4 = arith.addi %3, %c0_i32_3 : i32
    %c2_i32 = arith.constant 2 : i32
    %5 = arith.subi %4, %c2_i32 : i32
    %c0_i32_4 = arith.constant 0 : i32
    %6 = arith.cmpi sge, %5, %c0_i32_4 : i32
    %c8_i32 = arith.constant 8 : i32
    %7 = arith.cmpi slt, %5, %c8_i32 : i32
    %8 = arith.andi %6, %7 : i1
    %c0_i32_5 = arith.constant 0 : i32
    %c7_i32 = arith.constant 7 : i32
    %9 = arith.maxsi %c0_i32_5, %5 : i32
    %10 = arith.minsi %c7_i32, %9 : i32
    %c0_6 = arith.constant 0 : index
    %11 = arith.index_cast %10 : i32 to index
    %c0_7 = arith.constant 0 : index
    %c0_8 = arith.constant 0 : index
    %12 = vector.load %arg3[%c0_6, %11, %c0_7, %c0_8] : memref<1x8x16x16xf32, #tpu.memory_space<vmem>>, vector<1x1x16x16xf32>
    %13 = vector.shape_cast %12 : vector<1x1x16x16xf32> to vector<16x16xf32>
    %c0_9 = arith.constant 0 : index
    %14 = memref.load %arg2[%c0_9] : memref<5xf32, #tpu.memory_space<smem>>
    %cst = arith.constant 0.000000e+00 : f32
    %15 = arith.select %8, %14, %cst : f32
    %16 = vector.broadcast %15 : f32 to vector<16x16xf32>
    %17 = arith.mulf %16, %13 : vector<16x16xf32>
    %c0_i32_10 = arith.constant 0 : i32
    %18 = arith.addi %0, %c0_i32_10 : i32
    %c1_i32 = arith.constant 1 : i32
    %19 = arith.addi %18, %c1_i32 : i32
    %c2_i32_11 = arith.constant 2 : i32
    %20 = arith.subi %19, %c2_i32_11 : i32
    %c0_i32_12 = arith.constant 0 : i32
    %21 = arith.cmpi sge, %20, %c0_i32_12 : i32
    %c8_i32_13 = arith.constant 8 : i32
    %22 = arith.cmpi slt, %20, %c8_i32_13 : i32
    %23 = arith.andi %21, %22 : i1
    %c0_i32_14 = arith.constant 0 : i32
    %c7_i32_15 = arith.constant 7 : i32
    %24 = arith.maxsi %c0_i32_14, %20 : i32
    %25 = arith.minsi %c7_i32_15, %24 : i32
    %c0_16 = arith.constant 0 : index
    %26 = arith.index_cast %25 : i32 to index
    %c0_17 = arith.constant 0 : index
    %c0_18 = arith.constant 0 : index
    %27 = vector.load %arg3[%c0_16, %26, %c0_17, %c0_18] : memref<1x8x16x16xf32, #tpu.memory_space<vmem>>, vector<1x1x16x16xf32>
    %28 = vector.shape_cast %27 : vector<1x1x16x16xf32> to vector<16x16xf32>
    %c1 = arith.constant 1 : index
    %29 = memref.load %arg2[%c1] : memref<5xf32, #tpu.memory_space<smem>>
    %cst_19 = arith.constant 0.000000e+00 : f32
    %30 = arith.select %23, %29, %cst_19 : f32
    %31 = vector.broadcast %30 : f32 to vector<16x16xf32>
    %32 = arith.mulf %31, %28 : vector<16x16xf32>
    %33 = arith.addf %17, %32 : vector<16x16xf32>
    %c0_i32_20 = arith.constant 0 : i32
    %34 = arith.addi %0, %c0_i32_20 : i32
    %c2_i32_21 = arith.constant 2 : i32
    %35 = arith.addi %34, %c2_i32_21 : i32
    %c2_i32_22 = arith.constant 2 : i32
    %36 = arith.subi %35, %c2_i32_22 : i32
    %c0_i32_23 = arith.constant 0 : i32
    %37 = arith.cmpi sge, %36, %c0_i32_23 : i32
    %c8_i32_24 = arith.constant 8 : i32
    %38 = arith.cmpi slt, %36, %c8_i32_24 : i32
    %39 = arith.andi %37, %38 : i1
    %c0_i32_25 = arith.constant 0 : i32
    %c7_i32_26 = arith.constant 7 : i32
    %40 = arith.maxsi %c0_i32_25, %36 : i32
    %41 = arith.minsi %c7_i32_26, %40 : i32
    %c0_27 = arith.constant 0 : index
    %42 = arith.index_cast %41 : i32 to index
    %c0_28 = arith.constant 0 : index
    %c0_29 = arith.constant 0 : index
    %43 = vector.load %arg3[%c0_27, %42, %c0_28, %c0_29] : memref<1x8x16x16xf32, #tpu.memory_space<vmem>>, vector<1x1x16x16xf32>
    %44 = vector.shape_cast %43 : vector<1x1x16x16xf32> to vector<16x16xf32>
    %c2 = arith.constant 2 : index
    %45 = memref.load %arg2[%c2] : memref<5xf32, #tpu.memory_space<smem>>
    %cst_30 = arith.constant 0.000000e+00 : f32
    %46 = arith.select %39, %45, %cst_30 : f32
    %47 = vector.broadcast %46 : f32 to vector<16x16xf32>
    %48 = arith.mulf %47, %44 : vector<16x16xf32>
    %49 = arith.addf %33, %48 : vector<16x16xf32>
    %c0_i32_31 = arith.constant 0 : i32
    %50 = arith.addi %0, %c0_i32_31 : i32
    %c3_i32 = arith.constant 3 : i32
    %51 = arith.addi %50, %c3_i32 : i32
    %c2_i32_32 = arith.constant 2 : i32
    %52 = arith.subi %51, %c2_i32_32 : i32
    %c0_i32_33 = arith.constant 0 : i32
    %53 = arith.cmpi sge, %52, %c0_i32_33 : i32
    %c8_i32_34 = arith.constant 8 : i32
    %54 = arith.cmpi slt, %52, %c8_i32_34 : i32
    %55 = arith.andi %53, %54 : i1
    %c0_i32_35 = arith.constant 0 : i32
    %c7_i32_36 = arith.constant 7 : i32
    %56 = arith.maxsi %c0_i32_35, %52 : i32
    %57 = arith.minsi %c7_i32_36, %56 : i32
    %c0_37 = arith.constant 0 : index
    %58 = arith.index_cast %57 : i32 to index
    %c0_38 = arith.constant 0 : index
    %c0_39 = arith.constant 0 : index
    %59 = vector.load %arg3[%c0_37, %58, %c0_38, %c0_39] : memref<1x8x16x16xf32, #tpu.memory_space<vmem>>, vector<1x1x16x16xf32>
    %60 = vector.shape_cast %59 : vector<1x1x16x16xf32> to vector<16x16xf32>
    %c3 = arith.constant 3 : index
    %61 = memref.load %arg2[%c3] : memref<5xf32, #tpu.memory_space<smem>>
    %cst_40 = arith.constant 0.000000e+00 : f32
    %62 = arith.select %55, %61, %cst_40 : f32
    %63 = vector.broadcast %62 : f32 to vector<16x16xf32>
    %64 = arith.mulf %63, %60 : vector<16x16xf32>
    %65 = arith.addf %49, %64 : vector<16x16xf32>
    %c0_i32_41 = arith.constant 0 : i32
    %66 = arith.addi %0, %c0_i32_41 : i32
    %c4_i32_42 = arith.constant 4 : i32
    %67 = arith.addi %66, %c4_i32_42 : i32
    %c2_i32_43 = arith.constant 2 : i32
    %68 = arith.subi %67, %c2_i32_43 : i32
    %c0_i32_44 = arith.constant 0 : i32
    %69 = arith.cmpi sge, %68, %c0_i32_44 : i32
    %c8_i32_45 = arith.constant 8 : i32
    %70 = arith.cmpi slt, %68, %c8_i32_45 : i32
    %71 = arith.andi %69, %70 : i1
    %c0_i32_46 = arith.constant 0 : i32
    %c7_i32_47 = arith.constant 7 : i32
    %72 = arith.maxsi %c0_i32_46, %68 : i32
    %73 = arith.minsi %c7_i32_47, %72 : i32
    %c0_48 = arith.constant 0 : index
    %74 = arith.index_cast %73 : i32 to index
    %c0_49 = arith.constant 0 : index
    %c0_50 = arith.constant 0 : index
    %75 = vector.load %arg3[%c0_48, %74, %c0_49, %c0_50] : memref<1x8x16x16xf32, #tpu.memory_space<vmem>>, vector<1x1x16x16xf32>
    %76 = vector.shape_cast %75 : vector<1x1x16x16xf32> to vector<16x16xf32>
    %c4 = arith.constant 4 : index
    %77 = memref.load %arg2[%c4] : memref<5xf32, #tpu.memory_space<smem>>
    %cst_51 = arith.constant 0.000000e+00 : f32
    %78 = arith.select %71, %77, %cst_51 : f32
    %79 = vector.broadcast %78 : f32 to vector<16x16xf32>
    %80 = arith.mulf %79, %76 : vector<16x16xf32>
    %81 = arith.addf %65, %80 : vector<16x16xf32>
    %cst_52 = arith.constant dense<0.000000e+00> : vector<16x16xf32>
    %82 = tpu.matmul %1, %81, %cst_52 {dimension_numbers = #tpu.dot_dimension_numbers<[1], [0], [0], [1], [0, 0, 1, 1], [], []>} : vector<16x16xf32>, vector<16x16xf32>, vector<16x16xf32> -> vector<16x16xf32>
    %cst_53 = arith.constant dense<0.000000e+00> : vector<16x16xf32>
    %83 = tpu.matmul %82, %2, %cst_53 {dimension_numbers = #tpu.dot_dimension_numbers<[1], [0], [0], [1], [0, 0, 1, 1], [], []>} : vector<16x16xf32>, vector<16x16xf32>, vector<16x16xf32> -> vector<16x16xf32>
    %c0_54 = arith.constant 0 : index
    %c0_55 = arith.constant 0 : index
    %c0_56 = arith.constant 0 : index
    %c0_57 = arith.constant 0 : index
    %84 = vector.load %arg6[%c0_54, %c0_55, %c0_56, %c0_57] : memref<1x4x16x16xf32, #tpu.memory_space<vmem>>, vector<1x1x16x16xf32>
    %85 = vector.shape_cast %84 : vector<1x1x16x16xf32> to vector<16x16xf32>
    %86 = vector.shape_cast %83 : vector<16x16xf32> to vector<1x1x16x16xf32>
    tpu.vector_store %arg6[%c0_54, %c0_55, %c0_56, %c0_57], %86 {strides = array<i32>} : memref<1x4x16x16xf32, #tpu.memory_space<vmem>>, vector<1x1x16x16xf32>,
    %c1_i32_58 = arith.constant 1 : i32
    %87 = arith.addi %0, %c1_i32_58 : i32
    %c0_i32_59 = arith.constant 0 : i32
    %88 = arith.addi %87, %c0_i32_59 : i32
    %c2_i32_60 = arith.constant 2 : i32
    %89 = arith.subi %88, %c2_i32_60 : i32
    %c0_i32_61 = arith.constant 0 : i32
    %90 = arith.cmpi sge, %89, %c0_i32_61 : i32
    %c8_i32_62 = arith.constant 8 : i32
    %91 = arith.cmpi slt, %89, %c8_i32_62 : i32
    %92 = arith.andi %90, %91 : i1
    %c0_i32_63 = arith.constant 0 : i32
    %c7_i32_64 = arith.constant 7 : i32
    %93 = arith.maxsi %c0_i32_63, %89 : i32
    %94 = arith.minsi %c7_i32_64, %93 : i32
    %c0_65 = arith.constant 0 : index
    %95 = arith.index_cast %94 : i32 to index
    %c0_66 = arith.constant 0 : index
    %c0_67 = arith.constant 0 : index
    %96 = vector.load %arg3[%c0_65, %95, %c0_66, %c0_67] : memref<1x8x16x16xf32, #tpu.memory_space<vmem>>, vector<1x1x16x16xf32>
    %97 = vector.shape_cast %96 : vector<1x1x16x16xf32> to vector<16x16xf32>
    %c0_68 = arith.constant 0 : index
    %98 = memref.load %arg2[%c0_68] : memref<5xf32, #tpu.memory_space<smem>>
    %cst_69 = arith.constant 0.000000e+00 : f32
    %99 = arith.select %92, %98, %cst_69 : f32
    %100 = vector.broadcast %99 : f32 to vector<16x16xf32>
    %101 = arith.mulf %100, %97 : vector<16x16xf32>
    %c1_i32_70 = arith.constant 1 : i32
    %102 = arith.addi %0, %c1_i32_70 : i32
    %c1_i32_71 = arith.constant 1 : i32
    %103 = arith.addi %102, %c1_i32_71 : i32
    %c2_i32_72 = arith.constant 2 : i32
    %104 = arith.subi %103, %c2_i32_72 : i32
    %c0_i32_73 = arith.constant 0 : i32
    %105 = arith.cmpi sge, %104, %c0_i32_73 : i32
    %c8_i32_74 = arith.constant 8 : i32
    %106 = arith.cmpi slt, %104, %c8_i32_74 : i32
    %107 = arith.andi %105, %106 : i1
    %c0_i32_75 = arith.constant 0 : i32
    %c7_i32_76 = arith.constant 7 : i32
    %108 = arith.maxsi %c0_i32_75, %104 : i32
    %109 = arith.minsi %c7_i32_76, %108 : i32
    %c0_77 = arith.constant 0 : index
    %110 = arith.index_cast %109 : i32 to index
    %c0_78 = arith.constant 0 : index
    %c0_79 = arith.constant 0 : index
    %111 = vector.load %arg3[%c0_77, %110, %c0_78, %c0_79] : memref<1x8x16x16xf32, #tpu.memory_space<vmem>>, vector<1x1x16x16xf32>
    %112 = vector.shape_cast %111 : vector<1x1x16x16xf32> to vector<16x16xf32>
    %c1_80 = arith.constant 1 : index
    %113 = memref.load %arg2[%c1_80] : memref<5xf32, #tpu.memory_space<smem>>
    %cst_81 = arith.constant 0.000000e+00 : f32
    %114 = arith.select %107, %113, %cst_81 : f32
    %115 = vector.broadcast %114 : f32 to vector<16x16xf32>
    %116 = arith.mulf %115, %112 : vector<16x16xf32>
    %117 = arith.addf %101, %116 : vector<16x16xf32>
    %c1_i32_82 = arith.constant 1 : i32
    %118 = arith.addi %0, %c1_i32_82 : i32
    %c2_i32_83 = arith.constant 2 : i32
    %119 = arith.addi %118, %c2_i32_83 : i32
    %c2_i32_84 = arith.constant 2 : i32
    %120 = arith.subi %119, %c2_i32_84 : i32
    %c0_i32_85 = arith.constant 0 : i32
    %121 = arith.cmpi sge, %120, %c0_i32_85 : i32
    %c8_i32_86 = arith.constant 8 : i32
    %122 = arith.cmpi slt, %120, %c8_i32_86 : i32
    %123 = arith.andi %121, %122 : i1
    %c0_i32_87 = arith.constant 0 : i32
    %c7_i32_88 = arith.constant 7 : i32
    %124 = arith.maxsi %c0_i32_87, %120 : i32
    %125 = arith.minsi %c7_i32_88, %124 : i32
    %c0_89 = arith.constant 0 : index
    %126 = arith.index_cast %125 : i32 to index
    %c0_90 = arith.constant 0 : index
    %c0_91 = arith.constant 0 : index
    %127 = vector.load %arg3[%c0_89, %126, %c0_90, %c0_91] : memref<1x8x16x16xf32, #tpu.memory_space<vmem>>, vector<1x1x16x16xf32>
    %128 = vector.shape_cast %127 : vector<1x1x16x16xf32> to vector<16x16xf32>
    %c2_92 = arith.constant 2 : index
    %129 = memref.load %arg2[%c2_92] : memref<5xf32, #tpu.memory_space<smem>>
    %cst_93 = arith.constant 0.000000e+00 : f32
    %130 = arith.select %123, %129, %cst_93 : f32
    %131 = vector.broadcast %130 : f32 to vector<16x16xf32>
    %132 = arith.mulf %131, %128 : vector<16x16xf32>
    %133 = arith.addf %117, %132 : vector<16x16xf32>
    %c1_i32_94 = arith.constant 1 : i32
    %134 = arith.addi %0, %c1_i32_94 : i32
    %c3_i32_95 = arith.constant 3 : i32
    %135 = arith.addi %134, %c3_i32_95 : i32
    %c2_i32_96 = arith.constant 2 : i32
    %136 = arith.subi %135, %c2_i32_96 : i32
    %c0_i32_97 = arith.constant 0 : i32
    %137 = arith.cmpi sge, %136, %c0_i32_97 : i32
    %c8_i32_98 = arith.constant 8 : i32
    %138 = arith.cmpi slt, %136, %c8_i32_98 : i32
    %139 = arith.andi %137, %138 : i1
    %c0_i32_99 = arith.constant 0 : i32
    %c7_i32_100 = arith.constant 7 : i32
    %140 = arith.maxsi %c0_i32_99, %136 : i32
    %141 = arith.minsi %c7_i32_100, %140 : i32
    %c0_101 = arith.constant 0 : index
    %142 = arith.index_cast %141 : i32 to index
    %c0_102 = arith.constant 0 : index
    %c0_103 = arith.constant 0 : index
    %143 = vector.load %arg3[%c0_101, %142, %c0_102, %c0_103] : memref<1x8x16x16xf32, #tpu.memory_space<vmem>>, vector<1x1x16x16xf32>
    %144 = vector.shape_cast %143 : vector<1x1x16x16xf32> to vector<16x16xf32>
    %c3_104 = arith.constant 3 : index
    %145 = memref.load %arg2[%c3_104] : memref<5xf32, #tpu.memory_space<smem>>
    %cst_105 = arith.constant 0.000000e+00 : f32
    %146 = arith.select %139, %145, %cst_105 : f32
    %147 = vector.broadcast %146 : f32 to vector<16x16xf32>
    %148 = arith.mulf %147, %144 : vector<16x16xf32>
    %149 = arith.addf %133, %148 : vector<16x16xf32>
    %c1_i32_106 = arith.constant 1 : i32
    %150 = arith.addi %0, %c1_i32_106 : i32
    %c4_i32_107 = arith.constant 4 : i32
    %151 = arith.addi %150, %c4_i32_107 : i32
    %c2_i32_108 = arith.constant 2 : i32
    %152 = arith.subi %151, %c2_i32_108 : i32
    %c0_i32_109 = arith.constant 0 : i32
    %153 = arith.cmpi sge, %152, %c0_i32_109 : i32
    %c8_i32_110 = arith.constant 8 : i32
    %154 = arith.cmpi slt, %152, %c8_i32_110 : i32
    %155 = arith.andi %153, %154 : i1
    %c0_i32_111 = arith.constant 0 : i32
    %c7_i32_112 = arith.constant 7 : i32
    %156 = arith.maxsi %c0_i32_111, %152 : i32
    %157 = arith.minsi %c7_i32_112, %156 : i32
    %c0_113 = arith.constant 0 : index
    %158 = arith.index_cast %157 : i32 to index
    %c0_114 = arith.constant 0 : index
    %c0_115 = arith.constant 0 : index
    %159 = vector.load %arg3[%c0_113, %158, %c0_114, %c0_115] : memref<1x8x16x16xf32, #tpu.memory_space<vmem>>, vector<1x1x16x16xf32>
    %160 = vector.shape_cast %159 : vector<1x1x16x16xf32> to vector<16x16xf32>
    %c4_116 = arith.constant 4 : index
    %161 = memref.load %arg2[%c4_116] : memref<5xf32, #tpu.memory_space<smem>>
    %cst_117 = arith.constant 0.000000e+00 : f32
    %162 = arith.select %155, %161, %cst_117 : f32
    %163 = vector.broadcast %162 : f32 to vector<16x16xf32>
    %164 = arith.mulf %163, %160 : vector<16x16xf32>
    %165 = arith.addf %149, %164 : vector<16x16xf32>
    %cst_118 = arith.constant dense<0.000000e+00> : vector<16x16xf32>
    %166 = tpu.matmul %1, %165, %cst_118 {dimension_numbers = #tpu.dot_dimension_numbers<[1], [0], [0], [1], [0, 0, 1, 1], [], []>} : vector<16x16xf32>, vector<16x16xf32>, vector<16x16xf32> -> vector<16x16xf32>
    %cst_119 = arith.constant dense<0.000000e+00> : vector<16x16xf32>
    %167 = tpu.matmul %166, %2, %cst_119 {dimension_numbers = #tpu.dot_dimension_numbers<[1], [0], [0], [1], [0, 0, 1, 1], [], []>} : vector<16x16xf32>, vector<16x16xf32>, vector<16x16xf32> -> vector<16x16xf32>
    %c0_120 = arith.constant 0 : index
    %c1_121 = arith.constant 1 : index
    %c0_122 = arith.constant 0 : index
    %c0_123 = arith.constant 0 : index
    %168 = vector.load %arg6[%c0_120, %c1_121, %c0_122, %c0_123] : memref<1x4x16x16xf32, #tpu.memory_space<vmem>>, vector<1x1x16x16xf32>
    %169 = vector.shape_cast %168 : vector<1x1x16x16xf32> to vector<16x16xf32>
    %170 = vector.shape_cast %167 : vector<16x16xf32> to vector<1x1x16x16xf32>
    tpu.vector_store %arg6[%c0_120, %c1_121, %c0_122, %c0_123], %170 {strides = array<i32>} : memref<1x4x16x16xf32, #tpu.memory_space<vmem>>, vector<1x1x16x16xf32>,
    %c2_i32_124 = arith.constant 2 : i32
    %171 = arith.addi %0, %c2_i32_124 : i32
    %c0_i32_125 = arith.constant 0 : i32
    %172 = arith.addi %171, %c0_i32_125 : i32
    %c2_i32_126 = arith.constant 2 : i32
    %173 = arith.subi %172, %c2_i32_126 : i32
    %c0_i32_127 = arith.constant 0 : i32
    %174 = arith.cmpi sge, %173, %c0_i32_127 : i32
    %c8_i32_128 = arith.constant 8 : i32
    %175 = arith.cmpi slt, %173, %c8_i32_128 : i32
    %176 = arith.andi %174, %175 : i1
    %c0_i32_129 = arith.constant 0 : i32
    %c7_i32_130 = arith.constant 7 : i32
    %177 = arith.maxsi %c0_i32_129, %173 : i32
    %178 = arith.minsi %c7_i32_130, %177 : i32
    %c0_131 = arith.constant 0 : index
    %179 = arith.index_cast %178 : i32 to index
    %c0_132 = arith.constant 0 : index
    %c0_133 = arith.constant 0 : index
    %180 = vector.load %arg3[%c0_131, %179, %c0_132, %c0_133] : memref<1x8x16x16xf32, #tpu.memory_space<vmem>>, vector<1x1x16x16xf32>
    %181 = vector.shape_cast %180 : vector<1x1x16x16xf32> to vector<16x16xf32>
    %c0_134 = arith.constant 0 : index
    %182 = memref.load %arg2[%c0_134] : memref<5xf32, #tpu.memory_space<smem>>
    %cst_135 = arith.constant 0.000000e+00 : f32
    %183 = arith.select %176, %182, %cst_135 : f32
    %184 = vector.broadcast %183 : f32 to vector<16x16xf32>
    %185 = arith.mulf %184, %181 : vector<16x16xf32>
    %c2_i32_136 = arith.constant 2 : i32
    %186 = arith.addi %0, %c2_i32_136 : i32
    %c1_i32_137 = arith.constant 1 : i32
    %187 = arith.addi %186, %c1_i32_137 : i32
    %c2_i32_138 = arith.constant 2 : i32
    %188 = arith.subi %187, %c2_i32_138 : i32
    %c0_i32_139 = arith.constant 0 : i32
    %189 = arith.cmpi sge, %188, %c0_i32_139 : i32
    %c8_i32_140 = arith.constant 8 : i32
    %190 = arith.cmpi slt, %188, %c8_i32_140 : i32
    %191 = arith.andi %189, %190 : i1
    %c0_i32_141 = arith.constant 0 : i32
    %c7_i32_142 = arith.constant 7 : i32
    %192 = arith.maxsi %c0_i32_141, %188 : i32
    %193 = arith.minsi %c7_i32_142, %192 : i32
    %c0_143 = arith.constant 0 : index
    %194 = arith.index_cast %193 : i32 to index
    %c0_144 = arith.constant 0 : index
    %c0_145 = arith.constant 0 : index
    %195 = vector.load %arg3[%c0_143, %194, %c0_144, %c0_145] : memref<1x8x16x16xf32, #tpu.memory_space<vmem>>, vector<1x1x16x16xf32>
    %196 = vector.shape_cast %195 : vector<1x1x16x16xf32> to vector<16x16xf32>
    %c1_146 = arith.constant 1 : index
    %197 = memref.load %arg2[%c1_146] : memref<5xf32, #tpu.memory_space<smem>>
    %cst_147 = arith.constant 0.000000e+00 : f32
    %198 = arith.select %191, %197, %cst_147 : f32
    %199 = vector.broadcast %198 : f32 to vector<16x16xf32>
    %200 = arith.mulf %199, %196 : vector<16x16xf32>
    %201 = arith.addf %185, %200 : vector<16x16xf32>
    %c2_i32_148 = arith.constant 2 : i32
    %202 = arith.addi %0, %c2_i32_148 : i32
    %c2_i32_149 = arith.constant 2 : i32
    %203 = arith.addi %202, %c2_i32_149 : i32
    %c2_i32_150 = arith.constant 2 : i32
    %204 = arith.subi %203, %c2_i32_150 : i32
    %c0_i32_151 = arith.constant 0 : i32
    %205 = arith.cmpi sge, %204, %c0_i32_151 : i32
    %c8_i32_152 = arith.constant 8 : i32
    %206 = arith.cmpi slt, %204, %c8_i32_152 : i32
    %207 = arith.andi %205, %206 : i1
    %c0_i32_153 = arith.constant 0 : i32
    %c7_i32_154 = arith.constant 7 : i32
    %208 = arith.maxsi %c0_i32_153, %204 : i32
    %209 = arith.minsi %c7_i32_154, %208 : i32
    %c0_155 = arith.constant 0 : index
    %210 = arith.index_cast %209 : i32 to index
    %c0_156 = arith.constant 0 : index
    %c0_157 = arith.constant 0 : index
    %211 = vector.load %arg3[%c0_155, %210, %c0_156, %c0_157] : memref<1x8x16x16xf32, #tpu.memory_space<vmem>>, vector<1x1x16x16xf32>
    %212 = vector.shape_cast %211 : vector<1x1x16x16xf32> to vector<16x16xf32>
    %c2_158 = arith.constant 2 : index
    %213 = memref.load %arg2[%c2_158] : memref<5xf32, #tpu.memory_space<smem>>
    %cst_159 = arith.constant 0.000000e+00 : f32
    %214 = arith.select %207, %213, %cst_159 : f32
    %215 = vector.broadcast %214 : f32 to vector<16x16xf32>
    %216 = arith.mulf %215, %212 : vector<16x16xf32>
    %217 = arith.addf %201, %216 : vector<16x16xf32>
    %c2_i32_160 = arith.constant 2 : i32
    %218 = arith.addi %0, %c2_i32_160 : i32
    %c3_i32_161 = arith.constant 3 : i32
    %219 = arith.addi %218, %c3_i32_161 : i32
    %c2_i32_162 = arith.constant 2 : i32
    %220 = arith.subi %219, %c2_i32_162 : i32
    %c0_i32_163 = arith.constant 0 : i32
    %221 = arith.cmpi sge, %220, %c0_i32_163 : i32
    %c8_i32_164 = arith.constant 8 : i32
    %222 = arith.cmpi slt, %220, %c8_i32_164 : i32
    %223 = arith.andi %221, %222 : i1
    %c0_i32_165 = arith.constant 0 : i32
    %c7_i32_166 = arith.constant 7 : i32
    %224 = arith.maxsi %c0_i32_165, %220 : i32
    %225 = arith.minsi %c7_i32_166, %224 : i32
    %c0_167 = arith.constant 0 : index
    %226 = arith.index_cast %225 : i32 to index
    %c0_168 = arith.constant 0 : index
    %c0_169 = arith.constant 0 : index
    %227 = vector.load %arg3[%c0_167, %226, %c0_168, %c0_169] : memref<1x8x16x16xf32, #tpu.memory_space<vmem>>, vector<1x1x16x16xf32>
    %228 = vector.shape_cast %227 : vector<1x1x16x16xf32> to vector<16x16xf32>
    %c3_170 = arith.constant 3 : index
    %229 = memref.load %arg2[%c3_170] : memref<5xf32, #tpu.memory_space<smem>>
    %cst_171 = arith.constant 0.000000e+00 : f32
    %230 = arith.select %223, %229, %cst_171 : f32
    %231 = vector.broadcast %230 : f32 to vector<16x16xf32>
    %232 = arith.mulf %231, %228 : vector<16x16xf32>
    %233 = arith.addf %217, %232 : vector<16x16xf32>
    %c2_i32_172 = arith.constant 2 : i32
    %234 = arith.addi %0, %c2_i32_172 : i32
    %c4_i32_173 = arith.constant 4 : i32
    %235 = arith.addi %234, %c4_i32_173 : i32
    %c2_i32_174 = arith.constant 2 : i32
    %236 = arith.subi %235, %c2_i32_174 : i32
    %c0_i32_175 = arith.constant 0 : i32
    %237 = arith.cmpi sge, %236, %c0_i32_175 : i32
    %c8_i32_176 = arith.constant 8 : i32
    %238 = arith.cmpi slt, %236, %c8_i32_176 : i32
    %239 = arith.andi %237, %238 : i1
    %c0_i32_177 = arith.constant 0 : i32
    %c7_i32_178 = arith.constant 7 : i32
    %240 = arith.maxsi %c0_i32_177, %236 : i32
    %241 = arith.minsi %c7_i32_178, %240 : i32
    %c0_179 = arith.constant 0 : index
    %242 = arith.index_cast %241 : i32 to index
    %c0_180 = arith.constant 0 : index
    %c0_181 = arith.constant 0 : index
    %243 = vector.load %arg3[%c0_179, %242, %c0_180, %c0_181] : memref<1x8x16x16xf32, #tpu.memory_space<vmem>>, vector<1x1x16x16xf32>
    %244 = vector.shape_cast %243 : vector<1x1x16x16xf32> to vector<16x16xf32>
    %c4_182 = arith.constant 4 : index
    %245 = memref.load %arg2[%c4_182] : memref<5xf32, #tpu.memory_space<smem>>
    %cst_183 = arith.constant 0.000000e+00 : f32
    %246 = arith.select %239, %245, %cst_183 : f32
    %247 = vector.broadcast %246 : f32 to vector<16x16xf32>
    %248 = arith.mulf %247, %244 : vector<16x16xf32>
    %249 = arith.addf %233, %248 : vector<16x16xf32>
    %cst_184 = arith.constant dense<0.000000e+00> : vector<16x16xf32>
    %250 = tpu.matmul %1, %249, %cst_184 {dimension_numbers = #tpu.dot_dimension_numbers<[1], [0], [0], [1], [0, 0, 1, 1], [], []>} : vector<16x16xf32>, vector<16x16xf32>, vector<16x16xf32> -> vector<16x16xf32>
    %cst_185 = arith.constant dense<0.000000e+00> : vector<16x16xf32>
    %251 = tpu.matmul %250, %2, %cst_185 {dimension_numbers = #tpu.dot_dimension_numbers<[1], [0], [0], [1], [0, 0, 1, 1], [], []>} : vector<16x16xf32>, vector<16x16xf32>, vector<16x16xf32> -> vector<16x16xf32>
    %c0_186 = arith.constant 0 : index
    %c2_187 = arith.constant 2 : index
    %c0_188 = arith.constant 0 : index
    %c0_189 = arith.constant 0 : index
    %252 = vector.load %arg6[%c0_186, %c2_187, %c0_188, %c0_189] : memref<1x4x16x16xf32, #tpu.memory_space<vmem>>, vector<1x1x16x16xf32>
    %253 = vector.shape_cast %252 : vector<1x1x16x16xf32> to vector<16x16xf32>
    %254 = vector.shape_cast %251 : vector<16x16xf32> to vector<1x1x16x16xf32>
    tpu.vector_store %arg6[%c0_186, %c2_187, %c0_188, %c0_189], %254 {strides = array<i32>} : memref<1x4x16x16xf32, #tpu.memory_space<vmem>>, vector<1x1x16x16xf32>,
    %c3_i32_190 = arith.constant 3 : i32
    %255 = arith.addi %0, %c3_i32_190 : i32
    %c0_i32_191 = arith.constant 0 : i32
    %256 = arith.addi %255, %c0_i32_191 : i32
    %c2_i32_192 = arith.constant 2 : i32
    %257 = arith.subi %256, %c2_i32_192 : i32
    %c0_i32_193 = arith.constant 0 : i32
    %258 = arith.cmpi sge, %257, %c0_i32_193 : i32
    %c8_i32_194 = arith.constant 8 : i32
    %259 = arith.cmpi slt, %257, %c8_i32_194 : i32
    %260 = arith.andi %258, %259 : i1
    %c0_i32_195 = arith.constant 0 : i32
    %c7_i32_196 = arith.constant 7 : i32
    %261 = arith.maxsi %c0_i32_195, %257 : i32
    %262 = arith.minsi %c7_i32_196, %261 : i32
    %c0_197 = arith.constant 0 : index
    %263 = arith.index_cast %262 : i32 to index
    %c0_198 = arith.constant 0 : index
    %c0_199 = arith.constant 0 : index
    %264 = vector.load %arg3[%c0_197, %263, %c0_198, %c0_199] : memref<1x8x16x16xf32, #tpu.memory_space<vmem>>, vector<1x1x16x16xf32>
    %265 = vector.shape_cast %264 : vector<1x1x16x16xf32> to vector<16x16xf32>
    %c0_200 = arith.constant 0 : index
    %266 = memref.load %arg2[%c0_200] : memref<5xf32, #tpu.memory_space<smem>>
    %cst_201 = arith.constant 0.000000e+00 : f32
    %267 = arith.select %260, %266, %cst_201 : f32
    %268 = vector.broadcast %267 : f32 to vector<16x16xf32>
    %269 = arith.mulf %268, %265 : vector<16x16xf32>
    %c3_i32_202 = arith.constant 3 : i32
    %270 = arith.addi %0, %c3_i32_202 : i32
    %c1_i32_203 = arith.constant 1 : i32
    %271 = arith.addi %270, %c1_i32_203 : i32
    %c2_i32_204 = arith.constant 2 : i32
    %272 = arith.subi %271, %c2_i32_204 : i32
    %c0_i32_205 = arith.constant 0 : i32
    %273 = arith.cmpi sge, %272, %c0_i32_205 : i32
    %c8_i32_206 = arith.constant 8 : i32
    %274 = arith.cmpi slt, %272, %c8_i32_206 : i32
    %275 = arith.andi %273, %274 : i1
    %c0_i32_207 = arith.constant 0 : i32
    %c7_i32_208 = arith.constant 7 : i32
    %276 = arith.maxsi %c0_i32_207, %272 : i32
    %277 = arith.minsi %c7_i32_208, %276 : i32
    %c0_209 = arith.constant 0 : index
    %278 = arith.index_cast %277 : i32 to index
    %c0_210 = arith.constant 0 : index
    %c0_211 = arith.constant 0 : index
    %279 = vector.load %arg3[%c0_209, %278, %c0_210, %c0_211] : memref<1x8x16x16xf32, #tpu.memory_space<vmem>>, vector<1x1x16x16xf32>
    %280 = vector.shape_cast %279 : vector<1x1x16x16xf32> to vector<16x16xf32>
    %c1_212 = arith.constant 1 : index
    %281 = memref.load %arg2[%c1_212] : memref<5xf32, #tpu.memory_space<smem>>
    %cst_213 = arith.constant 0.000000e+00 : f32
    %282 = arith.select %275, %281, %cst_213 : f32
    %283 = vector.broadcast %282 : f32 to vector<16x16xf32>
    %284 = arith.mulf %283, %280 : vector<16x16xf32>
    %285 = arith.addf %269, %284 : vector<16x16xf32>
    %c3_i32_214 = arith.constant 3 : i32
    %286 = arith.addi %0, %c3_i32_214 : i32
    %c2_i32_215 = arith.constant 2 : i32
    %287 = arith.addi %286, %c2_i32_215 : i32
    %c2_i32_216 = arith.constant 2 : i32
    %288 = arith.subi %287, %c2_i32_216 : i32
    %c0_i32_217 = arith.constant 0 : i32
    %289 = arith.cmpi sge, %288, %c0_i32_217 : i32
    %c8_i32_218 = arith.constant 8 : i32
    %290 = arith.cmpi slt, %288, %c8_i32_218 : i32
    %291 = arith.andi %289, %290 : i1
    %c0_i32_219 = arith.constant 0 : i32
    %c7_i32_220 = arith.constant 7 : i32
    %292 = arith.maxsi %c0_i32_219, %288 : i32
    %293 = arith.minsi %c7_i32_220, %292 : i32
    %c0_221 = arith.constant 0 : index
    %294 = arith.index_cast %293 : i32 to index
    %c0_222 = arith.constant 0 : index
    %c0_223 = arith.constant 0 : index
    %295 = vector.load %arg3[%c0_221, %294, %c0_222, %c0_223] : memref<1x8x16x16xf32, #tpu.memory_space<vmem>>, vector<1x1x16x16xf32>
    %296 = vector.shape_cast %295 : vector<1x1x16x16xf32> to vector<16x16xf32>
    %c2_224 = arith.constant 2 : index
    %297 = memref.load %arg2[%c2_224] : memref<5xf32, #tpu.memory_space<smem>>
    %cst_225 = arith.constant 0.000000e+00 : f32
    %298 = arith.select %291, %297, %cst_225 : f32
    %299 = vector.broadcast %298 : f32 to vector<16x16xf32>
    %300 = arith.mulf %299, %296 : vector<16x16xf32>
    %301 = arith.addf %285, %300 : vector<16x16xf32>
    %c3_i32_226 = arith.constant 3 : i32
    %302 = arith.addi %0, %c3_i32_226 : i32
    %c3_i32_227 = arith.constant 3 : i32
    %303 = arith.addi %302, %c3_i32_227 : i32
    %c2_i32_228 = arith.constant 2 : i32
    %304 = arith.subi %303, %c2_i32_228 : i32
    %c0_i32_229 = arith.constant 0 : i32
    %305 = arith.cmpi sge, %304, %c0_i32_229 : i32
    %c8_i32_230 = arith.constant 8 : i32
    %306 = arith.cmpi slt, %304, %c8_i32_230 : i32
    %307 = arith.andi %305, %306 : i1
    %c0_i32_231 = arith.constant 0 : i32
    %c7_i32_232 = arith.constant 7 : i32
    %308 = arith.maxsi %c0_i32_231, %304 : i32
    %309 = arith.minsi %c7_i32_232, %308 : i32
    %c0_233 = arith.constant 0 : index
    %310 = arith.index_cast %309 : i32 to index
    %c0_234 = arith.constant 0 : index
    %c0_235 = arith.constant 0 : index
    %311 = vector.load %arg3[%c0_233, %310, %c0_234, %c0_235] : memref<1x8x16x16xf32, #tpu.memory_space<vmem>>, vector<1x1x16x16xf32>
    %312 = vector.shape_cast %311 : vector<1x1x16x16xf32> to vector<16x16xf32>
    %c3_236 = arith.constant 3 : index
    %313 = memref.load %arg2[%c3_236] : memref<5xf32, #tpu.memory_space<smem>>
    %cst_237 = arith.constant 0.000000e+00 : f32
    %314 = arith.select %307, %313, %cst_237 : f32
    %315 = vector.broadcast %314 : f32 to vector<16x16xf32>
    %316 = arith.mulf %315, %312 : vector<16x16xf32>
    %317 = arith.addf %301, %316 : vector<16x16xf32>
    %c3_i32_238 = arith.constant 3 : i32
    %318 = arith.addi %0, %c3_i32_238 : i32
    %c4_i32_239 = arith.constant 4 : i32
    %319 = arith.addi %318, %c4_i32_239 : i32
    %c2_i32_240 = arith.constant 2 : i32
    %320 = arith.subi %319, %c2_i32_240 : i32
    %c0_i32_241 = arith.constant 0 : i32
    %321 = arith.cmpi sge, %320, %c0_i32_241 : i32
    %c8_i32_242 = arith.constant 8 : i32
    %322 = arith.cmpi slt, %320, %c8_i32_242 : i32
    %323 = arith.andi %321, %322 : i1
    %c0_i32_243 = arith.constant 0 : i32
    %c7_i32_244 = arith.constant 7 : i32
    %324 = arith.maxsi %c0_i32_243, %320 : i32
    %325 = arith.minsi %c7_i32_244, %324 : i32
    %c0_245 = arith.constant 0 : index
    %326 = arith.index_cast %325 : i32 to index
    %c0_246 = arith.constant 0 : index
    %c0_247 = arith.constant 0 : index
    %327 = vector.load %arg3[%c0_245, %326, %c0_246, %c0_247] : memref<1x8x16x16xf32, #tpu.memory_space<vmem>>, vector<1x1x16x16xf32>
    %328 = vector.shape_cast %327 : vector<1x1x16x16xf32> to vector<16x16xf32>
    %c4_248 = arith.constant 4 : index
    %329 = memref.load %arg2[%c4_248] : memref<5xf32, #tpu.memory_space<smem>>
    %cst_249 = arith.constant 0.000000e+00 : f32
    %330 = arith.select %323, %329, %cst_249 : f32
    %331 = vector.broadcast %330 : f32 to vector<16x16xf32>
    %332 = arith.mulf %331, %328 : vector<16x16xf32>
    %333 = arith.addf %317, %332 : vector<16x16xf32>
    %cst_250 = arith.constant dense<0.000000e+00> : vector<16x16xf32>
    %334 = tpu.matmul %1, %333, %cst_250 {dimension_numbers = #tpu.dot_dimension_numbers<[1], [0], [0], [1], [0, 0, 1, 1], [], []>} : vector<16x16xf32>, vector<16x16xf32>, vector<16x16xf32> -> vector<16x16xf32>
    %cst_251 = arith.constant dense<0.000000e+00> : vector<16x16xf32>
    %335 = tpu.matmul %334, %2, %cst_251 {dimension_numbers = #tpu.dot_dimension_numbers<[1], [0], [0], [1], [0, 0, 1, 1], [], []>} : vector<16x16xf32>, vector<16x16xf32>, vector<16x16xf32> -> vector<16x16xf32>
    %c0_252 = arith.constant 0 : index
    %c3_253 = arith.constant 3 : index
    %c0_254 = arith.constant 0 : index
    %c0_255 = arith.constant 0 : index
    %336 = vector.load %arg6[%c0_252, %c3_253, %c0_254, %c0_255] : memref<1x4x16x16xf32, #tpu.memory_space<vmem>>, vector<1x1x16x16xf32>
    %337 = vector.shape_cast %336 : vector<1x1x16x16xf32> to vector<16x16xf32>
    %338 = vector.shape_cast %335 : vector<16x16xf32> to vector<1x1x16x16xf32>
    tpu.vector_store %arg6[%c0_252, %c3_253, %c0_254, %c0_255], %338 {strides = array<i32>} : memref<1x4x16x16xf32, #tpu.memory_space<vmem>>, vector<1x1x16x16xf32>,
    return
  }
  func.func @transform_0(%arg0: i32, %arg1: i32) -> i32 {
    %c0_i32 = arith.constant 0 : i32
    %c0_i32_0 = arith.constant 0 : i32
    return %c0_i32 : i32
  }
  func.func @transform_1(%arg0: i32, %arg1: i32) -> (i32, i32, i32, i32) {
    %c0_i32 = arith.constant 0 : i32
    %c0_i32_0 = arith.constant 0 : i32
    %c0_i32_1 = arith.constant 0 : i32
    %c0_i32_2 = arith.constant 0 : i32
    return %arg0, %c0_i32, %c0_i32_0, %c0_i32_1 : i32, i32, i32, i32
  }
  func.func @transform_2(%arg0: i32, %arg1: i32) -> (i32, i32) {
    %c0_i32 = arith.constant 0 : i32
    %c0_i32_0 = arith.constant 0 : i32
    %c0_i32_1 = arith.constant 0 : i32
    return %c0_i32, %c0_i32_0 : i32, i32
  }
  func.func @transform_3(%arg0: i32, %arg1: i32) -> (i32, i32) {
    %c0_i32 = arith.constant 0 : i32
    %c0_i32_0 = arith.constant 0 : i32
    %c0_i32_1 = arith.constant 0 : i32
    return %c0_i32, %c0_i32_0 : i32, i32
  }
  func.func @transform_4(%arg0: i32, %arg1: i32) -> (i32, i32, i32, i32) {
    %c0_i32 = arith.constant 0 : i32
    %c0_i32_0 = arith.constant 0 : i32
    %c0_i32_1 = arith.constant 0 : i32
    return %arg0, %arg1, %c0_i32, %c0_i32_0 : i32, i32, i32, i32
  }
}

</mosaic_0001>

<bundles_post_ra>
// kernel: tpu_custom_call.1
= control target key start
LH: loop header
LB: loop body
LE: loop exit
PB: predicated region body
PF: predicated region fallthrough
CT: control target
= control target key end

     0   :  { %s2568_s0 = inlined_call_operand.hbm [shape: f32[5], index: 0, kind: input, shape index: {}]   ;;  %s2569_s1 = inlined_call_operand.hbm [shape: f32[2,8,16,16], index: 1, kind: input, shape index: {}]   ;;  %s2570_s2 = inlined_call_operand.hbm [shape: f32[16,16], index: 2, kind: input, shape index: {}]   ;;  %s2571_s3 = inlined_call_operand.hbm [shape: f32[16,16], index: 3, kind: input, shape index: {}]   ;;  %s2572_s4 = inlined_call_operand.hbm [shape: f32[2,8,16,16], index: 4, kind: output, shape index: {}]  }
   0x1   :  { %2587 = sst [smem:[#allocation19_spill]] %s2568_s0 }
   0x2   :  { %2588 = sst [smem:[#allocation20_spill]] %s2570_s2 }
   0x3   :  { %2589 = sst [smem:[#allocation21_spill]] %s2571_s3 }
   0x4   :  { %2590 = sst [smem:[#allocation22_spill]] %s2572_s4 }
   0x5   :  { %9 = vsyncpa [#allocation5], 0 }
   0x6   :  { %10 = vsyncpa [#allocation3], 0 }
   0x7   :  { %12 = vsyncpa [#allocation3 + $0x1], 0 }
   0x8   :  { %13 = vsyncpa [#allocation8], 0 }
   0x9   :  { %14 = vsyncpa [#allocation4], 0 }
   0xa   :  { %16 = vsyncpa [#allocation4 + $0x1], 0  ;;  %s1999_s15 = smov 0   ;;  %s2001_s16 = smov 0  }
   0xb   :  { %s2003_s17 = smov 0   ;;  %s2005_s18 = smov 0  }
   0xc   :  { %s2007_s19 = smov 0   ;;  %s2009_s20 = smov 0  }
   0xd   :  { %s2011_s21 = smov 0   ;;  %s2013_s22 = smov 0  }
   0xe   :  { %s2015_s23 = smov 0   ;;  %s2017_s24 = smov 0  }
   0xf   :  { %s2019_s25 = smov 0  }
  0x10 LB: > { %2591 = sst [smem:[#allocation15_spill]] %s1923_s15  ;;  %s1329_s26 = sadd.s32 4294967295, %s1963_s25   ;;  %s1963_s25 = sphi %s2019_s25, %s22_s25   ;;  %s1959_s24 = sphi %s2017_s24, %s2637_s24   ;;  %s1955_s23 = sphi %s2015_s23, %s2636_s23   ;;  %s1951_s22 = sphi %s2013_s22, %s2635_s22   ;;  %s1947_s21 = sphi %s2011_s21, %s2634_s21   ;;  %s1943_s20 = sphi %s2009_s20, %s2633_s20   ;;  %s1939_s19 = sphi %s2007_s19, %s2632_s19   ;;  %s1935_s18 = sphi %s2005_s18, %s2631_s18   ;;  %s1931_s17 = sphi %s2003_s17, %s2630_s17   ;;  %s1927_s16 = sphi %s2001_s16, %s2629_s16   ;;  %s1923_s15 = sphi %s1999_s15, %s2628_s15  }
  0x11   : > { %s1330_s27 = sadd.s32 4294967294, %s1963_s25   ;;  %p75_p0 = scmp.ne.s32.totalorder %s1939_s19, %s1935_s18 }
  0x12   : > { %p2055_p1 = scmp.eq.s32.totalorder %s1329_s26, 0  ;;  %p142_p2 = scmp.ne.s32.totalorder %s1931_s17, %s1927_s16 }
  0x13   : > { %p143_p4 = scmp.eq.s32.totalorder %s1329_s26, 3  ;;  %p148_p5 = scmp.ne.s32.totalorder %s1927_s16, %s1923_s15 }
  0x14   : > { %s2592_s28 = scalar_select %p2055_p1, 1, 0 }
  0x15   : > { %p2064_p3 = por %p2055_p1, %p75_p0  ;;  %p149_p6 = scmp.eq.s32.totalorder %s1330_s27, 3 }
  0x16   : > { %p2070_p7 = por %p143_p4, %p142_p2  ;;  %p1331_p8 = scmp.ge.s32.totalorder %s1963_s25, 1 }
  0x17   : > { %s2593_s30 = scalar_select %p2064_p3, 1, 0 }
  0x18   : > { %s2594_s5 = scalar_select %p2070_p7, 1, 0 }
  0x19   : > { %p2075_p9 = por %p149_p6, %p148_p5  ;;  %p156_p10 = scmp.lt.s32.totalorder %s1963_s25, 5 }
  0x1a   : > { %2595 = sst [smem:[#allocation16_spill]] %s2594_s5  ;;  %s1965_s8 = smov [#allocation7]  }
  0x1b   : > { %s2596_s6 = scalar_select %p2075_p9, 1, 0 }
  0x1c   : > { %p2080_p11 = pnand %p1331_p8, %p156_p10  ;;  %s177_s9 = sshll.u32 %s1965_s8, 4  ;;  %s178_s9 = int_to_ptr.vmem [resolvable:$true] %s177_s9 }
  0x1d   : > { %2597 = sst [smem:[#allocation17_spill]] %s2596_s6  ;;  %s2600_s2 = sld [smem:[#allocation20_spill]] }
  0x1e   : > { %s2598_s7 = scalar_select %p2080_p11, 1, 0 }
  0x1f   : > { %p1613_p12 = pneg %p2080_p11 }
  0x21   : > { %p2088_p13 = pnand %p1613_p12, %p2055_p1 }
  0x23   : > { %s1734_s13 = scalar_lea.hbm %s2600_s2, 256  ;;  %p2100_p2 = pneg %p2088_p13 }
  0x24   : > { %p1735_p0 = scmp.ne.s32.totalorder %s2600_s2, %s1734_s13  ;;  %p1741_p6 = scmp.lt.u32.totalorder %s1734_s13, %s2600_s2 }
  0x26   : > { %p1737_p4 = pnand %p2100_p2, %p1735_p0 }
  0x28   : > { %p1738_p5 = pneg %p1737_p4 }
  0x2a   : > { %p1743_p8 = pnand %p1741_p6, %p1738_p5 }
  0x2c   : > { %1746 = shalt.err (!%p1743_p8)
}
  0x2d   : > { %s1747_s11 = scalar_lea.vmem %s178_s9, 256  ;;  %p1755_p7 = scmp.lt.s32.totalorder %s178_s9, %s178_s9 }
  0x2e   : > { %p1748_p10 = scmp.ne.s32.totalorder %s178_s9, %s1747_s11  ;;  %p1756_p3 = scmp.lt.s32.totalorder %s1747_s11, %s1747_s11 }
  0x30   : > { %p1750_p12 = pnand %p1748_p10, %p2100_p2  ;;  %p1757_p1 = por %p1756_p3, %p1755_p7 }
  0x32   : > { %p1751_p9 = pneg %p1750_p12 }
  0x34   : > { %p1758_p11 = pnand %p1757_p1, %p1751_p9 }
  0x36   : > { %1761 = shalt.err (!%p1758_p11)
}
  0x37   : > { %s2583_s12 = smov 128   ;;  %s2585_s14 = smov 8  }
  0x38   : > { %1619 = dma.hbm_to_vmem [thread:$0]  (!%p2088_p13), %s2600_s2, 256, %s178_s9, [#allocation8], %s2583_s12, %s2583_s12, %s2585_s14  }
  0x39   : > { %s2602_s0 = sld [smem:[#allocation19_spill]] }
  0x3f   : > { %s1762_s29 = scalar_lea.hbm %s2602_s0, 16 }
  0x40   : > { %p1763_p1 = scmp.ne.s32.totalorder %s2602_s0, %s1762_s29  ;;  %p1769_p9 = scmp.lt.u32.totalorder %s1762_s29, %s2602_s0 }
  0x42   : > { %p1765_p3 = pnand %p1763_p1, %p2100_p2 }
  0x44   : > { %p1766_p7 = pneg %p1765_p3 }
  0x46   : > { %p1771_p11 = pnand %p1769_p9, %p1766_p7 }
  0x48   : > { %1774 = shalt.err (!%p1771_p11)
}
  0x49   : > { %s1968_s5 = smov [#allocation2]   ;;  %s1969_s18 = smov [#allocation9]  }
  0x4a   : > { %1616 = dma.hbm_to_smem (!%p2088_p13), %s2602_s0, 16, %s1968_s5, [#allocation5]  }
  0x4b   : > { %s190_s6 = sshll.u32 %s1969_s18, 4  ;;  %s2603_s3 = sld [smem:[#allocation21_spill]]  ;;  %s191_s6 = int_to_ptr.vmem [resolvable:$true] %s190_s6 }
  0x51   : > { %s1775_s11 = scalar_lea.hbm %s2603_s3, 256 }
  0x52   : > { %p1776_p0 = scmp.ne.s32.totalorder %s2603_s3, %s1775_s11  ;;  %p1782_p6 = scmp.lt.u32.totalorder %s1775_s11, %s2603_s3 }
  0x54   : > { %p1778_p4 = pnand %p1776_p0, %p2100_p2 }
  0x56   : > { %p1779_p5 = pneg %p1778_p4 }
  0x58   : > { %p1784_p8 = pnand %p1782_p6, %p1779_p5 }
  0x5a   : > { %1787 = shalt.err (!%p1784_p8)
}
  0x5b   : > { %s1788_s5 = scalar_lea.vmem %s191_s6, 256  ;;  %p1796_p3 = scmp.lt.s32.totalorder %s191_s6, %s191_s6 }
  0x5c   : > { %p1789_p10 = scmp.ne.s32.totalorder %s191_s6, %s1788_s5  ;;  %p1797_p7 = scmp.lt.s32.totalorder %s1788_s5, %s1788_s5 }
  0x5e   : > { %p1791_p12 = pnand %p1789_p10, %p2100_p2  ;;  %p1798_p9 = por %p1797_p7, %p1796_p3 }
  0x60   : > { %p1792_p1 = pneg %p1791_p12 }
  0x62   : > { %p1799_p11 = pnand %p1798_p9, %p1792_p1 }
  0x64   : > { %1802 = shalt.err (!%p1799_p11)
}
  0x65   : > { %s2604_s12 = smov 128   ;;  %s31_s26 = sadd.s32 1, %s1955_s23 }
  0x66   : > { %1622 = dma.hbm_to_vmem [thread:$0]  (!%p2088_p13), %s2603_s3, 256, %s191_s6, [#allocation8], %s2604_s12, %s2604_s12, %s2585_s14  }
  0x67   : > { %p32_p2 = scmp.ge.s32.totalorder %s31_s26, 2  ;;  %s34_s10 = sadd.s32 1, %s1959_s24 }
  0x68   : > { %s62_s18 = sadd.s32 1, %s1943_s20  ;;  %p69_p0 = scmp.ne.s32.totalorder %s1943_s20, %s1939_s19 }
  0x69   : > { %s2639_s26 = smov (%p32_p2, %s31_s26), 0  ;;  %s2641_s10 = smov (!%p32_p2, %s34_s10), %s1959_s24 }
  0x6a   : > { %p70_p4 = scmp.eq.s32.totalorder %s1963_s25, 0  ;;  %s128_s27 = ssub.s32 %s1955_s23, %s2639_s26 }
  0x6b   : > { %p36_p5 = scmp.ge.s32.totalorder %s2641_s10, 2  ;;  %p1634_p6 = scmp.lt.s32.totalorder %s1963_s25, 4 }
  0x6c   : > { %p2168_p13 = por %p70_p4, %p69_p0  ;;  %s204_s8 = sand.u32 1, %s1943_s20  }
  0x6d   : > { %s2643_s10 = smov (%p36_p5, %s2641_s10), 0  ;;  %s1336_s11 = sshll.u32 %s204_s8, 7 }
  0x6e   : > { %2606 = sst [smem:[#allocation18_spill]] %s2643_s10  ;;  %s59_s4 = ssub.s32 %s1959_s24, %s2643_s10 }
  0x6f   : > { %p60_p8 = scmp.eq.s32.totalorder %s59_s4, 0  ;;  %s129_s15 = sor.u32 %s128_s27, %s59_s4 }
  0x70   : > { %p130_p10 = scmp.eq.s32.totalorder %s129_s15, 0  ;;  %s1459_s29 = sshll.u32 %s1959_s24, 11 }
  0x71   : > { %s2179_s5 = scalar_select %p60_p8, %s1943_s20, %s62_s18  }
  0x72   : > { %s2607_s9 = sadd.s32 1, %s1931_s17  ;;  %s2189_s2 = scalar_lea.hbm %s2569_s1, %s1459_s29 }
  0x73   : > { %s2184_s13 = scalar_select %p130_p10, %s1931_s17, %s2607_s9  }
  0x74   : > { %s208_s3 = scalar_lea.vmem [#allocation6], %s1336_s11  ;;  %p2197_p12 = pnand %p1634_p6, %p2168_p13 }
  0x75   : > { %s215_s10 = sshll.u32 %s208_s3, 4  ;;  %s2201_s27 = scalar_lea.sflag [#allocation3], %s204_s8  ;;  %s2191_s10 = int_to_ptr.vmem [resolvable:$true] %s215_s10 }
  0x76   : > { %s1803_s0 = scalar_lea.hbm %s2189_s2, 2048  ;;  %p1805_p3 = pneg %p2197_p12 }
  0x77   : > { %p1804_p1 = scmp.ne.s32.totalorder %s2189_s2, %s1803_s0  ;;  %s1808_s6 = scalar_lea.hbm %s2569_s1, 4096 }
  0x78   : > { %p1809_p11 = scmp.lt.u32.totalorder %s2189_s2, %s2569_s1  ;;  %p1810_p2 = scmp.lt.u32.totalorder %s1808_s6, %s1803_s0 }
  0x79   : > { %p1806_p7 = pnand %p1805_p3, %p1804_p1  ;;  %p1812_p4 = scmp.lt.u32.totalorder %s1803_s0, %s2189_s2 }
  0x7a   : > { %p1811_p0 = por %p1810_p2, %p1809_p11 }
  0x7b   : > { %p1807_p9 = pneg %p1806_p7 }
  0x7c   : > { %p1813_p5 = por %p1812_p4, %p1811_p0 }
  0x7e   : > { %p1814_p6 = pnand %p1813_p5, %p1807_p9 }
  0x80   : > { %1817 = shalt.err (!%p1814_p6)
}
  0x81   : > { %s1818_s8 = scalar_lea.vmem %s2191_s10, 2048  ;;  %s1970_s15 = smov [#allocation6]  }
  0x82   : > { %p1819_p13 = scmp.ne.s32.totalorder %s2191_s10, %s1818_s8  ;;  %s1823_s29 = sshll.u32 %s1970_s15, 4  ;;  %s1824_s29 = int_to_ptr.vmem [resolvable:$false] %s1823_s29 }
  0x83   : > { %s1825_s9 = scalar_lea.vmem %s1824_s29, 4096  ;;  %p1826_p1 = scmp.lt.s32.totalorder %s2191_s10, %s1824_s29 }
  0x84   : > { %p1821_p8 = pnand %p1819_p13, %p1805_p3  ;;  %p1827_p7 = scmp.lt.s32.totalorder %s1825_s9, %s1818_s8 }
  0x86   : > { %p1822_p10 = pneg %p1821_p8  ;;  %p1828_p11 = por %p1827_p7, %p1826_p1 }
  0x88   : > { %p1829_p2 = pnand %p1828_p11, %p1822_p10 }
  0x8a   : > { %1832 = shalt.err (!%p1829_p2)
}
  0x8b   : > { %s2609_s0 = smov 8   ;;  %p2610_p3 = scmp.ne.s32.totalorder %s2598_s7, 0 }
  0x8c   : > { %1626 = dma.hbm_to_vmem [thread:$0]  (!%p2197_p12), %s2189_s2, 2048, %s2191_s10, %s2201_s27, %s2604_s12, %s2604_s12, %s2609_s0  }
  0x8d   : > { %227 = sbr.rel (%p2610_p3) target bundleno = 673 (0x2a1), region = 36  ;;  %p2611_p9 = scmp.ne.s32.totalorder (!%p2610_p3), %s2592_s28, 0 }
  0x94   : > { %1906 = dma.done.wait (%p2611_p9), [#allocation5], 16  }
  0x95   : > { %1908 = vsyncadd (%p2611_p9), [#allocation5], 4294967280  ;;  %s233_s3 = sand.u32 1, %s1939_s19   ;;  %p2612_p0 = scmp.ne.s32.totalorder %s2593_s30, 0 }
  0x96   : > { %s1341_s18 = sshll.u32 %s233_s3, 7  ;;  %s234_s14 = scalar_lea.sflag [#allocation3], %s233_s3 }
  0x97   : > { %s2239_s6 = scalar_lea.vmem [#allocation6], %s1341_s18 }
  0x98   : > { %1910 = dma.done.wait (%p2612_p0), %s234_s14, 2048  }
  0x99   : > { %1912 = vsyncadd (%p2612_p0), %s234_s14, 4294965248 }
  0x9a   : > { %1914 = dma.done.wait (%p2611_p9), [#allocation8], 512  }
  0x9b   : > { %1916 = vsyncadd (%p2611_p9), [#allocation8], 4294966784 }
  0x9c   : > { %250 = sfence }
  0x9d   : > { %s2250_s2 = sshll.u32 %s1947_s21, 2  ;;  %s2252_s7 = sld [smem:[#allocation2]]  ;;  %v2254_v0 = vld [vmem:[#allocation7] sm:$0xff]  ;;  %vm374_vm0 = vcmask 130048   ;;  %v275_v1 = vld [vmem:[#allocation9] sm:$0xff]  ;;  %v276_v2 = vld [vmem:[#allocation9 + $0x8] sm:$0xff] }
  0x9e   : > { %s277_s30 = sadd.s32 4294967294, %s2250_s2  ;;  %s295_s12 = sadd.s32 4294967295, %s2250_s2  ;;  %1513 = vmatprep.mubr.msk.f32.mxu0 %vm374_vm0, %v2254_v0  ;;  %v2260_v3 = vpack.c.bf16 %v276_v2, %v275_v1  ;;  %v2378_v53 = vld [vmem:[#allocation7 + $0x8] sm:$0xff] }
  0x9f   : > { %p278_p12 = scmp.ge.s32.totalorder %s277_s30, 0  ;;  %p279_p4 = scmp.lt.s32.totalorder %s277_s30, 8 }
  0xa0   : > { %p282_p5 = scmp.gt.s32.totalorder %s277_s30, 0  ;;  %p1346_p6 = scmp.lt.s32.totalorder %s277_s30, 7  ;;  %1570 = vmatprep.subr.bf16.mxu1 %v2260_v3 }
  0xa1   : > { %p2262_p13 = pnand %p279_p4, %p278_p12  ;;  %p296_p8 = scmp.ge.s32.totalorder %s295_s12, 0  ;;  %1572 = vmatpush3.bf16.msra.mxu1 %v2260_v3 }
  0xa2   : > { %s2645_s30 = smov (!%p282_p5, %s277_s30), 0  ;;  %1578 = vmatprep.subr.bf16.mxu1 %v2260_v3  ;;  %p297_p10 = scmp.lt.s32.totalorder %s295_s12, 8 }
  0xa3   : > { %s1352_s10 = scalar_select %p2262_p13, 0.0, %s2252_s7 }
  0xa4   : > { %s2647_s30 = smov (!%p1346_p6, %s2645_s30), 7  ;;  %p300_p1 = scmp.gt.s32.totalorder %s295_s12, 0 }
  0xa5   : > { %s1351_s27 = sshll.u32 %s2647_s30, 4  ;;  %p1353_p7 = scmp.lt.s32.totalorder %s295_s12, 7  ;;  %v292_v5 = vstv %s1352_s10 }
  0xa6   : > { %s287_s11 = scalar_lea.vmem %s2239_s6, %s1351_s27 [#allocation6]  ;;  %p2273_p11 = pnand %p297_p10, %p296_p8 }
  0xa7   : > { %s2649_s12 = smov (!%p300_p1, %s295_s12), 0  ;;  %s2277_s8 = sld [smem:[#allocation2 + $0x1]]  ;;  %v288_v4 = vld [vmem:[%s287_s11] sm:$0xff]  ;;  %v289_v6 = vld [vmem:[%s287_s11 + $0x8] sm:$0xff] }
  0xa8   : > { %p315_p2 = scmp.ge.s32.totalorder %s2250_s2, 0  ;;  %s2651_s12 = smov (!%p1353_p7, %s2649_s12), 7  ;;  %v293_v10 = vmul.f32 %v292_v5, %v288_v4  ;;  %v294_v11 = vmul.f32 %v292_v5, %v289_v6 }
  0xa9   : > { %p316_p3 = scmp.lt.s32.totalorder %s2250_s2, 8  ;;  %p319_p9 = scmp.gt.s32.totalorder %s2250_s2, 0 }
  0xaa   : > { %s1358_s15 = sshll.u32 %s2651_s12, 4  ;;  %p1361_p0 = scmp.lt.s32.totalorder %s2250_s2, 7 }
  0xab   : > { %s305_s29 = scalar_lea.vmem %s2239_s6, %s1358_s15 [#allocation6]  ;;  %p2284_p12 = pnand %p316_p3, %p315_p2 }
  0xac   : > { %s320_s0 = scalar_select %p319_p9, %s2250_s2, 0  ;;  %v306_v7 = vld [vmem:[%s305_s29] sm:$0xff]  ;;  %v307_v8 = vld [vmem:[%s305_s29 + $0x8] sm:$0xff] }
  0xad   : > { %s1360_s3 = scalar_select %p2273_p11, 0.0, %s2277_s8 }
  0xae   : > { %s2653_s0 = smov (!%p1361_p0, %s320_s0), 7  ;;  %s2292_s18 = sld [smem:[#allocation2 + $0x2]] }
  0xaf   : > { %s334_s14 = sadd.s32 1, %s2250_s2  ;;  %s1366_s30 = sshll.u32 %s2653_s0, 4  ;;  %v310_v9 = vstv %s1360_s3 }
  0xb0   : > { %p335_p4 = scmp.ge.s32.totalorder %s334_s14, 0  ;;  %s324_s28 = scalar_lea.vmem %s2239_s6, %s1366_s30 [#allocation6]  ;;  %v311_v12 = vmul.f32 %v310_v9, %v306_v7  ;;  %v312_v13 = vmul.f32 %v310_v9, %v307_v8 }
  0xb1   : > { %p336_p5 = scmp.lt.s32.totalorder %s334_s14, 8  ;;  %p339_p6 = scmp.gt.s32.totalorder %s334_s14, 0  ;;  %v2305_v14 = vld [vmem:[%s324_s28] sm:$0xff]  ;;  %v2307_v15 = vld [vmem:[%s324_s28 + $0x8] sm:$0xff] }
  0xb2   : > { %p1369_p13 = scmp.lt.s32.totalorder %s334_s14, 7  ;;  %s2300_s27 = sld [smem:[#allocation2 + $0x3]]  ;;  %v313_v17 = vadd.f32 %v311_v12, %v293_v10  ;;  %v314_v18 = vadd.f32 %v312_v13, %v294_v11 }
  0xb3   : > { %p2296_p8 = pnand %p336_p5, %p335_p4  ;;  %s2655_s14 = smov (!%p339_p6, %s334_s14), 0 }
  0xb4   : > { %s1368_s15 = scalar_select %p2284_p12, 0.0, %s2292_s18 }
  0xb5   : > { %s2657_s14 = smov (!%p1369_p13, %s2655_s14), 7  ;;  %s354_s10 = sadd.s32 2, %s2250_s2 }
  0xb6   : > { %v329_v16 = vstv %s1368_s15  ;;  %s2310_s11 = sld [smem:[#allocation2 + $0x4]]  ;;  %s1374_s29 = sshll.u32 %s2657_s14, 4 }
  0xb7   : > { %p355_p10 = scmp.ge.s32.totalorder %s354_s10, 0  ;;  %s344_s0 = scalar_lea.vmem %s2239_s6, %s1374_s29 [#allocation6]  ;;  %v330_v19 = vmul.f32 %v329_v16, %v2305_v14  ;;  %v331_v20 = vmul.f32 %v329_v16, %v2307_v15 }
  0xb8   : > { %p356_p1 = scmp.lt.s32.totalorder %s354_s10, 8  ;;  %v2318_v21 = vld [vmem:[%s344_s0] sm:$0xff]  ;;  %v2320_v22 = vld [vmem:[%s344_s0 + $0x8] sm:$0xff]  ;;  %p359_p2 = scmp.gt.s32.totalorder %s354_s10, 0 }
  0xb9   : > { %s1376_s3 = scalar_select %p2296_p8, 0.0, %s2300_s27  ;;  %v332_v24 = vadd.f32 %v330_v19, %v313_v17  ;;  %v333_v25 = vadd.f32 %v331_v20, %v314_v18 }
  0xba   : > { %p2322_p7 = pnand %p356_p1, %p355_p10  ;;  %p1377_p3 = scmp.lt.s32.totalorder %s354_s10, 7 }
  0xbb   : > { %v349_v23 = vstv %s1376_s3  ;;  %s2327_s30 = sadd.s32 3, %s2250_s2  ;;  %s2659_s10 = smov (!%p359_p2, %s354_s10), 0 }
  0xbc   : > { %v350_v26 = vmul.f32 %v349_v23, %v2318_v21  ;;  %v351_v27 = vmul.f32 %v349_v23, %v2320_v22  ;;  %s1384_s28 = scalar_select %p2322_p7, 0.0, %s2310_s11 }
  0xbd   : > { %s2661_s10 = smov (!%p1377_p3, %s2659_s10), 7  ;;  %p574_p9 = scmp.ge.s32.totalorder %s2327_s30, 0 }
  0xbe   : > { %s1389_s15 = scalar_select %p2273_p11, 0.0, %s2252_s7  ;;  %v369_v28 = vstv %s1384_s28  ;;  %v352_v29 = vadd.f32 %v350_v26, %v332_v24  ;;  %v353_v30 = vadd.f32 %v351_v27, %v333_v25 }
  0xbf   : > { %s1382_s29 = sshll.u32 %s2661_s10, 4  ;;  %p575_p0 = scmp.lt.s32.totalorder %s2327_s30, 8 }
  0xc0   : > { %s364_s0 = scalar_lea.vmem %s2239_s6, %s1382_s29 [#allocation6]  ;;  %v543_v31 = vstv %s1389_s15  ;;  %p578_p4 = scmp.gt.s32.totalorder %s2327_s30, 0 }
  0xc1   : > { %v2340_v32 = vld [vmem:[%s364_s0] sm:$0xff]  ;;  %v2342_v33 = vld [vmem:[%s364_s0 + $0x8] sm:$0xff]  ;;  %s1391_s4 = scalar_select %p2284_p12, 0.0, %s2277_s8  ;;  %v544_v36 = vmul.f32 %v543_v31, %v306_v7  ;;  %v545_v37 = vmul.f32 %v543_v31, %v307_v8 }
  0xc2   : > { %v370_v34 = vmul.f32 %v369_v28, %v2340_v32  ;;  %v371_v35 = vmul.f32 %v369_v28, %v2342_v33  ;;  %s1393_s10 = scalar_select %p2296_p8, 0.0, %s2292_s18 }
  0xc3   : > { %v550_v38 = vstv %s1391_s4  ;;  %s1395_s3 = scalar_select %p2322_p7, 0.0, %s2300_s27 }
  0xc4   : > { %v372_v39 = vadd.f32 %v370_v34, %v352_v29  ;;  %v373_v40 = vadd.f32 %v371_v35, %v353_v30  ;;  %v551_v41 = vmul.f32 %v550_v38, %v2305_v14  ;;  %v552_v42 = vmul.f32 %v550_v38, %v2307_v15  ;;  %p2361_p11 = pnand %p575_p0, %p574_p9  ;;  %p1396_p5 = scmp.lt.s32.totalorder %s2327_s30, 7 }
  0xc5   : > { %v559_v43 = vstv %s1393_s10  ;;  %v568_v44 = vstv %s1395_s3  ;;  %s2368_s15 = sadd.s32 4, %s2250_s2  ;;  %s2663_s30 = smov (!%p578_p4, %s2327_s30), 0 }
  0xc6   : > { %v1565_v45 = vpack.c.bf16 %v373_v40, %v372_v39  ;;  %v553_v46 = vadd.f32 %v551_v41, %v544_v36  ;;  %v554_v47 = vadd.f32 %v552_v42, %v545_v37  ;;  %v560_v48 = vmul.f32 %v559_v43, %v2318_v21  ;;  %s1403_s29 = scalar_select %p2361_p11, 0.0, %s2310_s11 }
  0xc7   : > { %v561_v49 = vmul.f32 %v559_v43, %v2320_v22  ;;  %v569_v50 = vmul.f32 %v568_v44, %v2340_v32  ;;  %v570_v51 = vmul.f32 %v568_v44, %v2342_v33  ;;  %s2665_s30 = smov (!%p1396_p5, %s2663_s30), 7  ;;  %p787_p6 = scmp.ge.s32.totalorder %s2368_s15, 0 }
  0xc8   : > { %1566 = vmatprep.subr.bf16.mxu0 %v1565_v45  ;;  %v562_v52 = vadd.f32 %v560_v48, %v553_v46  ;;  %s1410_s0 = scalar_select %p2284_p12, 0.0, %s2252_s7  ;;  %v588_v55 = vstv %s1403_s29 }
  0xc9   : > { %1568 = vmatpush3.bf16.msra.mxu0 %v1565_v45  ;;  %v563_v54 = vadd.f32 %v561_v49, %v554_v47  ;;  %s1401_s4 = sshll.u32 %s2665_s30, 4  ;;  %p788_p13 = scmp.lt.s32.totalorder %s2368_s15, 8 }
  0xca   : > { %v571_v56 = vadd.f32 %v569_v50, %v562_v52  ;;  %s583_s10 = scalar_lea.vmem %s2239_s6, %s1401_s4 [#allocation6]  ;;  %v756_v58 = vstv %s1410_s0  ;;  %p791_p10 = scmp.gt.s32.totalorder %s2368_s15, 0 }
  0xcb   : > { %v572_v57 = vadd.f32 %v570_v51, %v563_v54  ;;  %v2388_v59 = vld [vmem:[%s583_s10] sm:$0xff]  ;;  %v2390_v60 = vld [vmem:[%s583_s10 + $0x8] sm:$0xff]  ;;  %s1412_s9 = scalar_select %p2296_p8, 0.0, %s2277_s8  ;;  %v757_v63 = vmul.f32 %v756_v58, %v2305_v14  ;;  %v758_v1 = vmul.f32 %v756_v58, %v2307_v15 }
  0xcc   : > { %1514 = vmatmul.mubr.msk.f32.vlgmr.msra.gmra.mrb[0].mxu0 %vm374_vm0, %v2378_v53  ;;  %v589_v61 = vmul.f32 %v588_v55, %v2388_v59  ;;  %v590_v62 = vmul.f32 %v588_v55, %v2390_v60  ;;  %s1414_s30 = scalar_select %p2322_p7, 0.0, %s2292_s18 }
  0xcd   : > { %1527 = vmatprep.mubr.msk.f32.mxu0 %vm374_vm0, %v2254_v0  ;;  %v763_v2 = vstv %s1412_s9  ;;  %s1416_s3 = scalar_select %p2361_p11, 0.0, %s2300_s27 }
  0xce   : > { %v591_v4 = vadd.f32 %v589_v61, %v571_v56  ;;  %v592_v5 = vadd.f32 %v590_v62, %v572_v57  ;;  %v764_v6 = vmul.f32 %v763_v2, %v2318_v21  ;;  %v765_v7 = vmul.f32 %v763_v2, %v2320_v22  ;;  %p2413_p12 = pnand %p788_p13, %p787_p6  ;;  %p1417_p1 = scmp.lt.s32.totalorder %s2368_s15, 7 }
  0xcf   : > { %v772_v8 = vstv %s1414_s30  ;;  %v781_v9 = vstv %s1416_s3  ;;  %s2420_s0 = sadd.s32 5, %s2250_s2  ;;  %s2667_s15 = smov (!%p791_p10, %s2368_s15), 0 }
  0xd0   : > { %v1573_v10 = vpack.c.bf16 %v592_v5, %v591_v4  ;;  %v766_v11 = vadd.f32 %v764_v6, %v757_v63  ;;  %v767_v12 = vadd.f32 %v765_v7, %v758_v1  ;;  %v773_v13 = vmul.f32 %v772_v8, %v2340_v32  ;;  %s1424_s4 = scalar_select %p2413_p12, 0.0, %s2310_s11 }
  0xd1   : > { %v774_v14 = vmul.f32 %v772_v8, %v2342_v33  ;;  %v782_v15 = vmul.f32 %v781_v9, %v2388_v59  ;;  %v783_v16 = vmul.f32 %v781_v9, %v2390_v60  ;;  %s2669_s15 = smov (!%p1417_p1, %s2667_s15), 7  ;;  %s2671_s7 = smov (%p2296_p8, %s2252_s7), 0.0 }
  0xd2   : > { %1574 = vmatprep.subr.bf16.mxu0 %v1573_v10  ;;  %v775_v17 = vadd.f32 %v773_v13, %v766_v11  ;;  %s1422_s2 = sshll.u32 %s2669_s15, 4  ;;  %v801_v19 = vstv %s1424_s4  ;;  %p1000_p2 = scmp.ge.s32.totalorder %s2420_s0, 0  ;;  %v969_v24 = vstv %s2671_s7 }
  0xd3   : > { %1576 = vmatpush3.bf16.msra.mxu0 %v1573_v10  ;;  %v776_v18 = vadd.f32 %v774_v14, %v767_v12  ;;  %s796_s10 = scalar_lea.vmem %s2239_s6, %s1422_s2 [#allocation6]  ;;  %p1001_p3 = scmp.lt.s32.totalorder %s2420_s0, 8  ;;  %v970_v29 = vmul.f32 %v969_v24, %v2318_v21  ;;  %v971_v30 = vmul.f32 %v969_v24, %v2320_v22 }
  0xd4   : > { %v784_v20 = vadd.f32 %v782_v15, %v775_v17  ;;  %v797_v25 = vld [vmem:[%s796_s10] sm:$0xff]  ;;  %v798_v26 = vld [vmem:[%s796_s10 + $0x8] sm:$0xff]  ;;  %s2673_s8 = smov (%p2322_p7, %s2277_s8), 0.0  ;;  %s2675_s18 = smov (%p2361_p11, %s2292_s18), 0.0 }
  0xd5   : > { %v785_v23 = vadd.f32 %v783_v16, %v776_v18  ;;  %v802_v27 = vmul.f32 %v801_v19, %v797_v25  ;;  %v803_v28 = vmul.f32 %v801_v19, %v798_v26  ;;  %v976_v31 = vstv %s2673_s8  ;;  %s2677_s27 = smov (%p2413_p12, %s2300_s27), 0.0  ;;  %p2457_p8 = pnand %p1001_p3, %p1000_p2 }
  0xd6   : > { %1528 = vmatmul.mubr.msk.f32.vlgmr.msra.gmra.mrb[2].mxu0 %vm374_vm0, %v2378_v53  ;;  %v977_v36 = vmul.f32 %v976_v31, %v2340_v32  ;;  %v978_v37 = vmul.f32 %v976_v31, %v2342_v33  ;;  %p1004_p7 = scmp.gt.s32.totalorder %s2420_s0, 0  ;;  %v985_v21 = vstv %s2675_s18  ;;  %v994_v22 = vstv %s2677_s27  ;;  %p1438_p9 = scmp.lt.s32.totalorder %s2420_s0, 7 }
  0xd7   : > { %1541 = vmatprep.mubr.msk.f32.mxu0 %vm374_vm0, %v2254_v0  ;;  %v804_v34 = vadd.f32 %v802_v27, %v784_v20  ;;  %v805_v35 = vadd.f32 %v803_v28, %v785_v23  ;;  %v986_v41 = vmul.f32 %v985_v21, %v2388_v59  ;;  %v987_v32 = vmul.f32 %v985_v21, %v2390_v60  ;;  %s2681_s11 = smov (%p2457_p8, %s2310_s11), 0.0  ;;  %s1476_s14 = sshll.u32 %s1947_s21, 3 }
  0xd8   : > { %v979_v39 = vadd.f32 %v977_v36, %v970_v29  ;;  %v980_v40 = vadd.f32 %v978_v37, %v971_v30  ;;  %s2679_s0 = smov (!%p1004_p7, %s2420_s0), 0  ;;  %v995_v33 = vmul.f32 %v994_v22, %v797_v25  ;;  %v996_v42 = vmul.f32 %v994_v22, %v798_v26  ;;  %s1455_s28 = sshll.u32 %s1951_s22, 4 }
  0xd9   : > { %v1581_v38 = vpack.c.bf16 %v805_v35, %v804_v34  ;;  %s2683_s0 = smov (!%p1438_p9, %s2679_s0), 7  ;;  %v1014_v45 = vstv %s2681_s11  ;;  %s2621_s11 = sld [smem:[#allocation16_spill]] }
  0xda   : > { %v988_v43 = vadd.f32 %v986_v41, %v979_v39  ;;  %v989_v44 = vadd.f32 %v987_v32, %v980_v40  ;;  %s1443_s8 = sshll.u32 %s2683_s0, 4  ;;  %s1192_s15 = sadd.s32 %s1476_s14, %s1455_s28 }
  0xdb   : > { %1582 = vmatprep.subr.bf16.mxu0 %v1581_v38  ;;  %s1009_s18 = scalar_lea.vmem %s2239_s6, %s1443_s8 [#allocation6]  ;;  %s268_s6 = sand.u32 1, %s1927_s16  }
  0xdc   : > { %1584 = vmatpush3.bf16.msra.mxu0 %v1581_v38  ;;  %v997_v46 = vadd.f32 %v995_v33, %v988_v43  ;;  %v998_v47 = vadd.f32 %v996_v42, %v989_v44  ;;  %v1010_v48 = vld [vmem:[%s1009_s18] sm:$0xff]  ;;  %v1011_v49 = vld [vmem:[%s1009_s18 + $0x8] sm:$0xff]  ;;  %s1344_s12 = sshll.u32 %s268_s6, 6  ;;  %s1456_s9 = sshll.u32 %s1192_s15, 7 }
  0xdd   : > { %v1015_v50 = vmul.f32 %v1014_v45, %v1010_v48  ;;  %v1016_v51 = vmul.f32 %v1014_v45, %v1011_v49  ;;  %s270_s27 = scalar_lea.vmem [#allocation10], %s1344_s12  ;;  %s2622_s0 = sld [smem:[#allocation22_spill]] }
  0xde   : > { %s1195_s30 = sshll.u32 %s270_s27, 4  ;;  %s2507_s21 = scalar_lea.sflag [#allocation4], %s268_s6  ;;  %s2503_s30 = int_to_ptr.vmem [resolvable:$true] %s1195_s30 }
  0xdf   : > { %1542 = vmatmul.mubr.msk.f32.vlgmr.msra.gmra.mrb[4].mxu0 %vm374_vm0, %v2378_v53  ;;  %v1017_v52 = vadd.f32 %v1015_v50, %v997_v46  ;;  %v1018_v54 = vadd.f32 %v1016_v51, %v998_v47  ;;  %s1833_s22 = scalar_lea.vmem %s2503_s30, 1024  ;;  %p2623_p11 = scmp.ne.s32.totalorder %s2621_s11, 0 }
  0xe0   : > { %1555 = vmatprep.mubr.msk.f32.mxu0 %vm374_vm0, %v2254_v0  ;;  %p1834_p0 = scmp.ne.s32.totalorder %s2503_s30, %s1833_s22  ;;  %s1971_s2 = smov [#allocation10]  }
  0xe1   : > { %v1589_v55 = vpack.c.bf16 %v1018_v54, %v1017_v52  ;;  %s1837_s10 = sshll.u32 %s1971_s2, 4  ;;  %s1838_s10 = int_to_ptr.vmem [resolvable:$false] %s1837_s10 }
  0xe2   : > { %p1835_p4 = pnand %p1834_p0, %p2623_p11  ;;  %s1839_s7 = scalar_lea.vmem %s1838_s10, 2048 }
  0xe3   : > { %1590 = vmatprep.subr.bf16.mxu0 %v1589_v55  ;;  %s2501_s4 = scalar_lea.hbm %s2622_s0, %s1456_s9  ;;  %p1840_p6 = scmp.lt.s32.totalorder %s2503_s30, %s1838_s10 }
  0xe4   : > { %1592 = vmatpush3.bf16.msra.mxu0 %v1589_v55  ;;  %p1836_p5 = pneg %p1835_p4  ;;  %p1841_p13 = scmp.lt.s32.totalorder %s1839_s7, %s1833_s22 }
  0xe6   : > { %p1842_p12 = por %p1841_p13, %p1840_p6 }
  0xe7   : > { %1556 = vmatmul.mubr.msk.f32.vlgmr.msra.gmra.mrb[6].mxu0 %vm374_vm0, %v2378_v53 }
  0xe8   : > { %p1843_p10 = pnand %p1842_p12, %p1836_p5 }
 0x19f   : > { %v1515_v56 = vpop.f32.mrb[0].mxu0 }
 0x1a0   : > { %v447_v57 = vpop.f32.mrb[1].mxu0 }
 0x1a1   : > { %1520 = vmatprep.mubr.msk.f32.mxu1 %vm374_vm0, %v447_v57 }
 0x1a2   : > { %1521 = vmatmul.mubr.msk.f32.vlgmr.msra.gmra.mrb[0].mxu1 %vm374_vm0, %v1515_v56 }
 0x1a3   : > { %1580 = vmatpush3.bf16.msra.mxu1 %v2260_v3 }
 0x1a4   : > { %1586 = vmatprep.subr.bf16.mxu1 %v2260_v3 }
 0x1a9   : > { %v1529_v0 = vpop.f32.mrb[2].mxu0 }
 0x1aa   : > { %v659_v58 = vpop.f32.mrb[3].mxu0 }
 0x1ab   : > { %1534 = vmatprep.mubr.msk.f32.mxu1 %vm374_vm0, %v659_v58 }
 0x1ac   : > { %1535 = vmatmul.mubr.msk.f32.vlgmr.msra.gmra.mrb[2].mxu1 %vm374_vm0, %v1529_v0 }
 0x1ad   : > { %1588 = vmatpush3.bf16.msra.mxu1 %v2260_v3 }
 0x1ae   : > { %1594 = vmatprep.subr.bf16.mxu1 %v2260_v3 }
 0x1b2   : > { %v1543_v53 = vpop.f32.mrb[4].mxu0 }
 0x1b3   : > { %v872_v59 = vpop.f32.mrb[5].mxu0 }
 0x1b4   : > { %1548 = vmatprep.mubr.msk.f32.mxu1 %vm374_vm0, %v872_v59 }
 0x1b5   : > { %1549 = vmatmul.mubr.msk.f32.vlgmr.msra.gmra.mrb[4].mxu1 %vm374_vm0, %v1543_v53 }
 0x1b6   : > { %1596 = vmatpush3.bf16.msra.mxu1 %v2260_v3 }
 0x1ba   : > { %v1557_v60 = vpop.f32.mrb[6].mxu0 }
 0x1bb   : > { %v1085_v61 = vpop.f32.mrb[7].mxu0 }
 0x1bc   : > { %1562 = vmatprep.mubr.msk.f32.mxu1 %vm374_vm0, %v1085_v61 }
 0x1bd   : > { %1563 = vmatmul.mubr.msk.f32.vlgmr.msra.gmra.mrb[6].mxu1 %vm374_vm0, %v1557_v60 }
 0x275   : > { %v1522_v62 = vpop.f32.mrb[0].mxu1 }
 0x276   : > { %538 = vst.msk [vmem:[%s270_s27 + $0x8] sm:$0xff] %vm374_vm0, %v1522_v62  ;;  %v528_v63 = vpop.f32.mrb[1].mxu1 }
 0x277   : > { %537 = vst.msk [vmem:[%s270_s27] sm:$0xff] %vm374_vm0, %v528_v63 }
 0x27f   : > { %v1536_v1 = vpop.f32.mrb[2].mxu1 }
 0x280   : > { %1409 = vst.msk [vmem:[%s270_s27 + $0x18] sm:$0xff] %vm374_vm0, %v1536_v1  ;;  %v740_v3 = vpop.f32.mrb[3].mxu1 }
 0x281   : > { %1408 = vst.msk [vmem:[%s270_s27 + $0x10] sm:$0xff] %vm374_vm0, %v740_v3 }
 0x288   : > { %v1550_v2 = vpop.f32.mrb[4].mxu1 }
 0x289   : > { %1430 = vst.msk [vmem:[%s270_s27 + $0x28] sm:$0xff] %vm374_vm0, %v1550_v2  ;;  %v953_v4 = vpop.f32.mrb[5].mxu1 }
 0x28a   : > { %1429 = vst.msk [vmem:[%s270_s27 + $0x20] sm:$0xff] %vm374_vm0, %v953_v4 }
 0x290   : > { %v1564_v5 = vpop.f32.mrb[6].mxu1 }
 0x291   : > { %1451 = vst.msk [vmem:[%s270_s27 + $0x38] sm:$0xff] %vm374_vm0, %v1564_v5  ;;  %v1166_v6 = vpop.f32.mrb[7].mxu1 }
 0x292   : > { %1450 = vst.msk [vmem:[%s270_s27 + $0x30] sm:$0xff] %vm374_vm0, %v1166_v6 }
 0x293   : > { %1846 = shalt.err (!%p1843_p10)
}
 0x294   : > { %s1847_s8 = scalar_lea.hbm %s2501_s4, 1024  ;;  %s1851_s12 = scalar_lea.hbm %s2622_s0, 4096 }
 0x295   : > { %p1848_p1 = scmp.ne.s32.totalorder %s2501_s4, %s1847_s8  ;;  %p1852_p8 = scmp.lt.u32.totalorder %s2501_s4, %s2622_s0 }
 0x296   : > { %p1853_p7 = scmp.lt.u32.totalorder %s1851_s12, %s1847_s8  ;;  %p1855_p0 = scmp.lt.u32.totalorder %s1847_s8, %s2501_s4 }
 0x297   : > { %p1849_p2 = pnand %p1848_p1, %p2623_p11 }
 0x298   : > { %p1854_p9 = por %p1853_p7, %p1852_p8 }
 0x299   : > { %p1850_p3 = pneg %p1849_p2 }
 0x29a   : > { %p1856_p4 = por %p1855_p0, %p1854_p9 }
 0x29c   : > { %p1857_p5 = pnand %p1856_p4, %p1850_p3 }
 0x29e   : > { %1860 = shalt.err (!%p1857_p5)
}
 0x29f   : > { %s1972_s28 = smov 128   ;;  %s1973_s15 = smov 8  }
 0x2a0   : > { %1611 = dma.vmem_to_hbm [thread:$0]  (%p2623_p11), %s2503_s30, 1024, %s2501_s4, %s2507_s21, %s1972_s28, %s1972_s28, %s1973_s15  }
 0x2a1 PF: > { %s2624_s9 = sld [smem:[#allocation15_spill]]  ;;  %s2625_s3 = sld [smem:[#allocation17_spill]] }
 0x2a2   : > { %p1638_p6 = scmp.ge.s32.totalorder %s1963_s25, 2 }
 0x2a7   : > { %s1210_s29 = sand.u32 1, %s2624_s9   ;;  %p2626_p13 = scmp.ne.s32.totalorder %s2625_s3, 0 }
 0x2a8   : > { %s1211_s22 = scalar_lea.sflag [#allocation4], %s1210_s29 }
 0x2a9   : > { %p1628_p12 = pnand %p1638_p6, %p2626_p13 }
 0x2ab   : > { %1918 = dma.done.wait (!%p1628_p12), %s1211_s22, 1024  }
 0x2ac   : > { %1920 = vsyncadd (!%p1628_p12), %s1211_s22, 4294966272  ;;  %s22_s25 = sadd.s32 1, %s1963_s25   ;;  %s2627_s11 = sld [smem:[#allocation18_spill]] }
 0x2ad   : > { %p19_p10 = scmp.ge.s32.totalorder %s22_s25, 6   ;;  %s2628_s15 = smov %s1927_s16 }
 0x2ae   : > { %s2629_s16 = smov %s1931_s17  ;;  %s2630_s17 = smov %s2184_s13 }
 0x2af   : > { %s2631_s18 = smov %s1939_s19  ;;  %s2632_s19 = smov %s1943_s20 }
 0x2b0   : > { %s2633_s20 = smov %s2179_s5  ;;  %s2634_s21 = smov %s1955_s23 }
 0x2b1   : > { %s2635_s22 = smov %s1959_s24  ;;  %s2636_s23 = smov %s2639_s26 }
 0x2b2   : > { %s2637_s24 = smov %s2627_s11  ;;  %21 = sbr.rel (!%p19_p10) target bundleno = 16 (0x10), region = 105 }
 0x2b9   :  { %1216 = vsyncpa [#allocation3], 1 }
 0x2ba   :  { %1218 = vsyncpa [#allocation3 + $0x1], 1 }
 0x2bb   :  { %1219 = vsyncpa [#allocation8], 1 }
 0x2bc   :  { %1220 = vsyncpa [#allocation4], 1 }
 0x2bd   :  { %1222 = vsyncpa [#allocation4 + $0x1], 1 }
 0x2be   :  { %1223 = vsyncpa [#allocation5], 1 }
 0x2bf   :  { %1225 = vsyncpa [#allocation5 + $0x1], 1 }

</bundles_post_ra>
